<compile_context>
chip_gen: v7x
topology: tpu7x:2x2x1
jax: 0.10.0
libtpu: 0.0.40
codegen_flags: <defaults>
</compile_context>

<pallas_src>
import functools

import jax
import jax.numpy as jnp
from jax import lax
from jax.experimental import pallas as pl
from jax.experimental.pallas import tpu as pltpu

BN_EPS = 1e-5


def _round_up(n, m):
    return ((n + m - 1) // m) * m


def _pad_axis(a, axis, target):
    pad = target - a.shape[axis]
    if pad == 0:
        return a
    widths = [(0, 0)] * a.ndim
    widths[axis] = (0, pad)
    return jnp.pad(a, widths)


def _vmem_capacity_bytes():
    try:
        return int(pltpu.get_tpu_info().vmem_capacity_bytes)
    except Exception:
        return 128 << 20  # v5e / v6e default


def _spec(block_shape, index_map, *, buffers=None):
    """BlockSpec; constant-index operands get a reduced pipeline buffer count."""
    if buffers is not None:
        try:
            return pl.BlockSpec(block_shape, index_map,
                                pipeline_mode=pl.Buffered(buffers))
        except (TypeError, AttributeError):  # jax without pipeline_mode support
            pass
    return pl.BlockSpec(block_shape, index_map)


# ----------------------------- fused kernel ---------------------------------
def _fused_mlp_kernel(x_ref, w1_ref, gamma_ref, beta_ref, w2_ref, b2_ref,
                      o_ref, h_ref, sum_ref, sq_ref, scale_ref, shift_ref,
                      *, inv_b):
    phase = pl.program_id(0)
    i = pl.program_id(1)

    # ---------------- phase 0: linear1 (bias-free) + BN statistics ----------
    @pl.when(phase == 0)
    def _():
        @pl.when(i == 0)
        def _():
            sum_ref[...] = jnp.zeros_like(sum_ref)
            sq_ref[...] = jnp.zeros_like(sq_ref)

        # b1 intentionally omitted: training-mode BatchNorm subtracts the batch
        # mean, which exactly cancels any constant bias added by linear1.
        h = jnp.dot(x_ref[...], w1_ref[...], preferred_element_type=jnp.float32)
        h_ref[i] = h.astype(h_ref.dtype)           # parked in VMEM, no HBM trip
        # NOTE: if these cross-sublane reductions ever bind (XLU) at large
        # tiles, they can be moved to the MXU as ones[1,tm] @ h / @ (h*h).
        sum_ref[...] += jnp.sum(h, axis=0, keepdims=True)        # sum(h)   [1,H]
        sq_ref[...] += jnp.sum(h * h, axis=0, keepdims=True)     # sum(h^2) [1,H]

    # ---------------- phase 1: folded BN + ReLU + linear2 -------------------
    @pl.when(phase == 1)
    def _():
        @pl.when(i == 0)
        def _():
            mean = sum_ref[...] * inv_b                                  # [1,H]
            var = jnp.maximum(sq_ref[...] * inv_b - mean * mean, 0.0)    # biased
            scale = gamma_ref[...] * lax.rsqrt(var + BN_EPS)
            scale_ref[...] = scale
            shift_ref[...] = beta_ref[...] - mean * scale

        h = h_ref[i].astype(jnp.float32)
        h = jnp.maximum(h * scale_ref[...] + shift_ref[...], 0.0)   # BN + ReLU
        y = jnp.dot(h.astype(w2_ref.dtype), w2_ref[...],
                    preferred_element_type=jnp.float32) + b2_ref[...]
        o_ref[...] = y.astype(o_ref.dtype)


# ------------------------------- wrapper -------------------------------------
def make_prediction_mlp(w1, b1, gamma, beta, w2, b2, *,
                        compute_dtype=jnp.bfloat16, resident_buffers=1):
    """Pads / casts parameters ONCE and returns a jitted forward(x).

    w1: [in_dim, hidden], w2: [hidden, out_dim] (pre-transposed vs. nn.Linear).
    b1 is accepted for API parity but unused: it is exactly cancelled by the
    batch-mean subtraction of training-mode BatchNorm1d.
    # TODO(synk): eval-mode BN (running_mean/running_var) would need b1 and a
    # stat-free kernel; only training-mode BN (as in the spec) is implemented.
    """
    del b1
    in_dim, hidden = w1.shape
    out_dim = w2.shape[1]

    k_p = _round_up(in_dim, 128)
    h_p = _round_up(hidden, 128)
    n_p = _round_up(out_dim, 128)

    cd = jnp.dtype(compute_dtype)
    # Parameters padded / cast ONCE (no per-call jnp.pad HBM copies of weights).
    w1_p = _pad_axis(_pad_axis(w1.astype(cd), 0, k_p), 1, h_p)
    w2_p = _pad_axis(_pad_axis(w2.astype(cd), 0, h_p), 1, n_p)
    gamma_p = _pad_axis(gamma.reshape(1, -1).astype(jnp.float32), 1, h_p)
    beta_p = _pad_axis(beta.reshape(1, -1).astype(jnp.float32), 1, h_p)
    b2_p = _pad_axis(b2.reshape(1, -1).astype(jnp.float32), 1, n_p)

    vmem_budget = int(0.45 * _vmem_capacity_bytes())  # Mosaic-scratch headroom
    rb = 2 if resident_buffers is None else resident_buffers

    def forward(x):
        B = x.shape[0]
        out_dtype = x.dtype
        cd_b = cd.itemsize
        out_b = jnp.dtype(out_dtype).itemsize

        def footprint(tm):
            b_pad = _round_up(B, tm)
            n_t = b_pad // tm
            return (2 * tm * k_p * cd_b                 # x block (double-buffered)
                    + rb * k_p * h_p * cd_b             # W1 (resident)
                    + rb * h_p * n_p * cd_b             # W2 (resident)
                    + rb * (2 * h_p + n_p) * 4          # gamma/beta/b2
                    + 2 * tm * n_p * out_b              # y block (double-buffered)
                    + n_t * tm * h_p * cd_b             # parked h scratch
                    + 4 * h_p * 4)                      # stats + scale/shift

        # Batch tile: minimise padding, prefer fewer grid steps, gate on VMEM.
        if B <= 512:
            cands = [_round_up(B, 8)]
        else:
            cands = sorted((512, 256, 128),
                           key=lambda t: (_round_up(B, t) - B, -t))
        tm = next((t for t in cands if footprint(t) <= vmem_budget), cands[-1])
        # TODO(synk): for very large B the parked-h scratch exceeds VMEM; a
        # two-phase fallback with a bf16 h round trip through HBM is needed then.

        b_p = _round_up(B, tm)
        n_tiles = b_p // tm
        x_p = _pad_axis(_pad_axis(x.astype(cd), 1, k_p), 0, b_p)

        kernel = functools.partial(_fused_mlp_kernel, inv_b=float(1.0 / B))

        y_full = pl.pallas_call(
            kernel,
            out_shape=jax.ShapeDtypeStruct((b_p, n_p), out_dtype),
            grid_spec=pltpu.PrefetchScalarGridSpec(
                num_scalar_prefetch=0,
                grid=(2, n_tiles),                        # (phase, batch tile)
                in_specs=[
                    # x streams tiles in phase 0, stays pinned to tile 0 in phase 1.
                    pl.BlockSpec((tm, k_p), lambda p, i: (i * (1 - p), 0)),
                    _spec((k_p, h_p), lambda p, i: (0, 0), buffers=resident_buffers),
                    _spec((1, h_p), lambda p, i: (0, 0), buffers=resident_buffers),
                    _spec((1, h_p), lambda p, i: (0, 0), buffers=resident_buffers),
                    _spec((h_p, n_p), lambda p, i: (0, 0), buffers=resident_buffers),
                    _spec((1, n_p), lambda p, i: (0, 0), buffers=resident_buffers),
                ],
                # Output written only in phase 1; during phase 0 its block index
                # stays pinned at 0, so no garbage write-back ever happens.
                out_specs=pl.BlockSpec((tm, n_p), lambda p, i: (i * p, 0)),
                scratch_shapes=[
                    pltpu.VMEM((n_tiles, tm, h_p), cd),       # parked h tiles
                    pltpu.VMEM((1, h_p), jnp.float32),        # sum(h)
                    pltpu.VMEM((1, h_p), jnp.float32),        # sum(h^2)
                    pltpu.VMEM((1, h_p), jnp.float32),        # folded BN scale
                    pltpu.VMEM((1, h_p), jnp.float32),        # folded BN shift
                ]),
            compiler_params=pltpu.CompilerParams(
                # Phase 1 depends on phase-0 stats held in core-local VMEM
                # scratch, so the grid must run sequentially on one TensorCore.
                dimension_semantics=("arbitrary", "arbitrary"),
                vmem_limit_bytes=int(max(footprint(tm) + (4 << 20), 16 << 20))),
            cost_estimate=pl.CostEstimate(
                flops=int(2 * b_p * k_p * h_p + 2 * b_p * h_p * n_p
                          + 8 * b_p * h_p),
                transcendentals=int(h_p),
                bytes_accessed=int(b_p * k_p * cd_b + k_p * h_p * cd_b
                                   + h_p * n_p * cd_b + b_p * n_p * out_b
                                   + (3 * h_p + n_p) * 4)),
        )(x_p, w1_p, gamma_p, beta_p, w2_p, b2_p)

        return y_full[:B, :out_dim]

    return jax.jit(forward)


# ------------------------------ reference ------------------------------------
def _reference_forward(x, w1, b1, gamma, beta, w2, b2):
    h = x @ w1 + b1
    mean = h.mean(axis=0, keepdims=True)
    var = ((h - mean) ** 2).mean(axis=0, keepdims=True)
    h = gamma * (h - mean) / jnp.sqrt(var + BN_EPS) + beta
    h = jnp.maximum(h, 0.0)
    return h @ w2 + b2


if __name__ == "__main__":
    # Small shapes consistent with the module (Linear -> BN1d -> ReLU -> Linear).
    B, in_dim, hidden_dim, out_dim = 8, 64, 256, 512

    key = jax.random.PRNGKey(0)
    kx, kw1, kb1, kw2, kb2 = jax.random.split(key, 5)

    x = jax.random.normal(kx, (B, in_dim), dtype=jnp.float32)

    lim1 = float(1.0 / jnp.sqrt(in_dim))
    w1 = jax.random.uniform(kw1, (in_dim, hidden_dim), minval=-lim1, maxval=lim1,
                            dtype=jnp.float32)
    b1 = jax.random.uniform(kb1, (hidden_dim,), minval=-lim1, maxval=lim1,
                            dtype=jnp.float32)
    lim2 = float(1.0 / jnp.sqrt(hidden_dim))
    w2 = jax.random.uniform(kw2, (hidden_dim, out_dim), minval=-lim2, maxval=lim2,
                            dtype=jnp.float32)
    b2 = jax.random.uniform(kb2, (out_dim,), minval=-lim2, maxval=lim2,
                            dtype=jnp.float32)
    # BatchNorm1d affine params (PyTorch init: weight=1, bias=0).
    gamma = jnp.ones((hidden_dim,), dtype=jnp.float32)
    beta = jnp.zeros((hidden_dim,), dtype=jnp.float32)

    def _run(compute_dtype, resident_buffers):
        fwd = make_prediction_mlp(w1, b1, gamma, beta, w2, b2,
                                  compute_dtype=compute_dtype,
                                  resident_buffers=resident_buffers)
        return jax.block_until_ready(fwd(x))

    try:
        out_f32 = _run(jnp.float32, 1)       # tight-accuracy path, Buffered(1)
        resident = 1
    except Exception:
        # Fallback for jax builds that reject single-buffer pipeline_mode.
        resident = None
        out_f32 = _run(jnp.float32, resident)
    out_bf16 = _run(jnp.bfloat16, resident)  # bf16 MXU fast path (default config)

    ref = _reference_forward(x, w1, b1, gamma, beta, w2, b2)
    assert out_f32.shape == (B, out_dim) and out_bf16.shape == (B, out_dim)

    err_f32 = float(jnp.max(jnp.abs(out_f32 - ref)))
    err_bf16 = float(jnp.max(jnp.abs(out_bf16 - ref)))
    assert jnp.allclose(out_f32, ref, atol=1e-3, rtol=1e-3), err_f32
    assert jnp.allclose(out_bf16, ref, atol=5e-2, rtol=5e-2), err_bf16

    print("KERNEL_OK")
</pallas_src>

<mosaic_0001>
module attributes {stable_mosaic.version = 11 : i64} {
  func.func @_fused_mlp_kernel(%arg0: i32, %arg1: i32, %arg2: memref<8x128xf32, #tpu.memory_space<vmem>>, %arg3: memref<128x256xf32, #tpu.memory_space<vmem>>, %arg4: memref<1x256xf32, #tpu.memory_space<vmem>>, %arg5: memref<1x256xf32, #tpu.memory_space<vmem>>, %arg6: memref<256x512xf32, #tpu.memory_space<vmem>>, %arg7: memref<1x512xf32, #tpu.memory_space<vmem>>, %arg8: memref<8x512xf32, #tpu.memory_space<vmem>>, %arg9: memref<1x8x256xf32, #tpu.memory_space<vmem>>, %arg10: memref<1x256xf32, #tpu.memory_space<vmem>>, %arg11: memref<1x256xf32, #tpu.memory_space<vmem>>, %arg12: memref<1x256xf32, #tpu.memory_space<vmem>>, %arg13: memref<1x256xf32, #tpu.memory_space<vmem>>) attributes {dimension_semantics = [#tpu.dimension_semantics<arbitrary>, #tpu.dimension_semantics<arbitrary>], iteration_bounds = array<i64: 2, 1>, scalar_prefetch = 0 : i64, scratch_operands = 5 : i64, tpu.core_type = #tpu.core_type<tc>, window_params = [{transform_indices = @transform_0, window_bounds = array<i64: 8, 128>}, {pipeline_mode = #tpu.pipeline_mode<synchronous>, transform_indices = @transform_1, window_bounds = array<i64: 128, 256>}, {pipeline_mode = #tpu.pipeline_mode<synchronous>, transform_indices = @transform_2, window_bounds = array<i64: 1, 256>}, {pipeline_mode = #tpu.pipeline_mode<synchronous>, transform_indices = @transform_3, window_bounds = array<i64: 1, 256>}, {pipeline_mode = #tpu.pipeline_mode<synchronous>, transform_indices = @transform_4, window_bounds = array<i64: 256, 512>}, {pipeline_mode = #tpu.pipeline_mode<synchronous>, transform_indices = @transform_5, window_bounds = array<i64: 1, 512>}, {transform_indices = @transform_6, window_bounds = array<i64: 8, 512>}]} {
    %c0_i32 = arith.constant 0 : i32
    %0 = arith.cmpi eq, %arg0, %c0_i32 : i32
    %1 = arith.extui %0 : i1 to i32
    %c0_i32_0 = arith.constant 0 : i32
    %2 = arith.cmpi ne, %1, %c0_i32_0 : i32
    scf.if %2 {
      %c0_i32_2 = arith.constant 0 : i32
      %6 = arith.cmpi eq, %arg1, %c0_i32_2 : i32
      %7 = arith.extui %6 : i1 to i32
      %c0_i32_3 = arith.constant 0 : i32
      %8 = arith.cmpi ne, %7, %c0_i32_3 : i32
      scf.if %8 {
        %cst_19 = arith.constant 0.000000e+00 : f32
        %27 = vector.broadcast %cst_19 : f32 to vector<1x256xf32>
        %c0_20 = arith.constant 0 : index
        %c0_21 = arith.constant 0 : index
        %28 = vector.load %arg10[%c0_20, %c0_21] : memref<1x256xf32, #tpu.memory_space<vmem>>, vector<1x256xf32>
        tpu.vector_store %arg10[%c0_20, %c0_21], %27 {strides = array<i32>} : memref<1x256xf32, #tpu.memory_space<vmem>>, vector<1x256xf32>,
        %cst_22 = arith.constant 0.000000e+00 : f32
        %29 = vector.broadcast %cst_22 : f32 to vector<1x256xf32>
        %c0_23 = arith.constant 0 : index
        %c0_24 = arith.constant 0 : index
        %30 = vector.load %arg11[%c0_23, %c0_24] : memref<1x256xf32, #tpu.memory_space<vmem>>, vector<1x256xf32>
        tpu.vector_store %arg11[%c0_23, %c0_24], %29 {strides = array<i32>} : memref<1x256xf32, #tpu.memory_space<vmem>>, vector<1x256xf32>,
      } else {
      }
      %c0 = arith.constant 0 : index
      %c0_4 = arith.constant 0 : index
      %9 = vector.load %arg2[%c0, %c0_4] : memref<8x128xf32, #tpu.memory_space<vmem>>, vector<8x128xf32>
      %c0_5 = arith.constant 0 : index
      %c0_6 = arith.constant 0 : index
      %10 = vector.load %arg3[%c0_5, %c0_6] : memref<128x256xf32, #tpu.memory_space<vmem>>, vector<128x256xf32>
      %cst = arith.constant dense<0.000000e+00> : vector<8x256xf32>
      %11 = tpu.matmul %9, %10, %cst {dimension_numbers = #tpu.dot_dimension_numbers<[1], [0], [0], [1], [0, 0, 1, 1], [], []>} : vector<8x128xf32>, vector<128x256xf32>, vector<8x256xf32> -> vector<8x256xf32>
      %12 = arith.index_cast %arg1 : i32 to index
      %c0_7 = arith.constant 0 : index
      %c0_8 = arith.constant 0 : index
      %13 = vector.load %arg9[%12, %c0_7, %c0_8] : memref<1x8x256xf32, #tpu.memory_space<vmem>>, vector<1x8x256xf32>
      %14 = vector.shape_cast %13 : vector<1x8x256xf32> to vector<8x256xf32>
      %15 = vector.shape_cast %11 : vector<8x256xf32> to vector<1x8x256xf32>
      tpu.vector_store %arg9[%12, %c0_7, %c0_8], %15 {strides = array<i32>} : memref<1x8x256xf32, #tpu.memory_space<vmem>>, vector<1x8x256xf32>,
      %c0_9 = arith.constant 0 : index
      %c0_10 = arith.constant 0 : index
      %16 = vector.load %arg10[%c0_9, %c0_10] : memref<1x256xf32, #tpu.memory_space<vmem>>, vector<1x256xf32>
      %cst_11 = arith.constant dense<0.000000e+00> : vector<256xf32>
      %17 = vector.multi_reduction <add>, %11, %cst_11 [0] : vector<8x256xf32> to vector<256xf32>
      %18 = vector.shape_cast %17 : vector<256xf32> to vector<1x256xf32>
      %19 = arith.addf %16, %18 : vector<1x256xf32>
      %c0_12 = arith.constant 0 : index
      %c0_13 = arith.constant 0 : index
      %20 = vector.load %arg10[%c0_12, %c0_13] : memref<1x256xf32, #tpu.memory_space<vmem>>, vector<1x256xf32>
      tpu.vector_store %arg10[%c0_12, %c0_13], %19 {strides = array<i32>} : memref<1x256xf32, #tpu.memory_space<vmem>>, vector<1x256xf32>,
      %c0_14 = arith.constant 0 : index
      %c0_15 = arith.constant 0 : index
      %21 = vector.load %arg11[%c0_14, %c0_15] : memref<1x256xf32, #tpu.memory_space<vmem>>, vector<1x256xf32>
      %22 = arith.mulf %11, %11 : vector<8x256xf32>
      %cst_16 = arith.constant dense<0.000000e+00> : vector<256xf32>
      %23 = vector.multi_reduction <add>, %22, %cst_16 [0] : vector<8x256xf32> to vector<256xf32>
      %24 = vector.shape_cast %23 : vector<256xf32> to vector<1x256xf32>
      %25 = arith.addf %21, %24 : vector<1x256xf32>
      %c0_17 = arith.constant 0 : index
      %c0_18 = arith.constant 0 : index
      %26 = vector.load %arg11[%c0_17, %c0_18] : memref<1x256xf32, #tpu.memory_space<vmem>>, vector<1x256xf32>
      tpu.vector_store %arg11[%c0_17, %c0_18], %25 {strides = array<i32>} : memref<1x256xf32, #tpu.memory_space<vmem>>, vector<1x256xf32>,
    } else {
    }
    %c1_i32 = arith.constant 1 : i32
    %3 = arith.cmpi eq, %arg0, %c1_i32 : i32
    %4 = arith.extui %3 : i1 to i32
    %c0_i32_1 = arith.constant 0 : i32
    %5 = arith.cmpi ne, %4, %c0_i32_1 : i32
    scf.if %5 {
      %c0_i32_2 = arith.constant 0 : i32
      %6 = arith.cmpi eq, %arg1, %c0_i32_2 : i32
      %7 = arith.extui %6 : i1 to i32
      %c0_i32_3 = arith.constant 0 : i32
      %8 = arith.cmpi ne, %7, %c0_i32_3 : i32
      scf.if %8 {
        %c0_16 = arith.constant 0 : index
        %c0_17 = arith.constant 0 : index
        %26 = vector.load %arg10[%c0_16, %c0_17] : memref<1x256xf32, #tpu.memory_space<vmem>>, vector<1x256xf32>
        %cst_18 = arith.constant 1.250000e-01 : f32
        %27 = vector.broadcast %cst_18 : f32 to vector<1x256xf32>
        %28 = arith.mulf %26, %27 : vector<1x256xf32>
        %c0_19 = arith.constant 0 : index
        %c0_20 = arith.constant 0 : index
        %29 = vector.load %arg11[%c0_19, %c0_20] : memref<1x256xf32, #tpu.memory_space<vmem>>, vector<1x256xf32>
        %cst_21 = arith.constant 1.250000e-01 : f32
        %30 = vector.broadcast %cst_21 : f32 to vector<1x256xf32>
        %31 = arith.mulf %29, %30 : vector<1x256xf32>
        %32 = arith.mulf %28, %28 : vector<1x256xf32>
        %33 = arith.subf %31, %32 : vector<1x256xf32>
        %cst_22 = arith.constant 0.000000e+00 : f32
        %34 = vector.broadcast %cst_22 : f32 to vector<1x256xf32>
        %35 = arith.maximumf %33, %34 : vector<1x256xf32>
        %c0_23 = arith.constant 0 : index
        %c0_24 = arith.constant 0 : index
        %36 = vector.load %arg4[%c0_23, %c0_24] : memref<1x256xf32, #tpu.memory_space<vmem>>, vector<1x256xf32>
        %cst_25 = arith.constant 9.99999974E-6 : f32
        %37 = vector.broadcast %cst_25 : f32 to vector<1x256xf32>
        %38 = arith.addf %35, %37 : vector<1x256xf32>
        %39 = math.rsqrt %38 : vector<1x256xf32>
        %40 = arith.mulf %36, %39 : vector<1x256xf32>
        %c0_26 = arith.constant 0 : index
        %c0_27 = arith.constant 0 : index
        %41 = vector.load %arg12[%c0_26, %c0_27] : memref<1x256xf32, #tpu.memory_space<vmem>>, vector<1x256xf32>
        tpu.vector_store %arg12[%c0_26, %c0_27], %40 {strides = array<i32>} : memref<1x256xf32, #tpu.memory_space<vmem>>, vector<1x256xf32>,
        %c0_28 = arith.constant 0 : index
        %c0_29 = arith.constant 0 : index
        %42 = vector.load %arg5[%c0_28, %c0_29] : memref<1x256xf32, #tpu.memory_space<vmem>>, vector<1x256xf32>
        %43 = arith.mulf %28, %40 : vector<1x256xf32>
        %44 = arith.subf %42, %43 : vector<1x256xf32>
        %c0_30 = arith.constant 0 : index
        %c0_31 = arith.constant 0 : index
        %45 = vector.load %arg13[%c0_30, %c0_31] : memref<1x256xf32, #tpu.memory_space<vmem>>, vector<1x256xf32>
        tpu.vector_store %arg13[%c0_30, %c0_31], %44 {strides = array<i32>} : memref<1x256xf32, #tpu.memory_space<vmem>>, vector<1x256xf32>,
      } else {
      }
      %9 = arith.index_cast %arg1 : i32 to index
      %c0 = arith.constant 0 : index
      %c0_4 = arith.constant 0 : index
      %10 = vector.load %arg9[%9, %c0, %c0_4] : memref<1x8x256xf32, #tpu.memory_space<vmem>>, vector<1x8x256xf32>
      %11 = vector.shape_cast %10 : vector<1x8x256xf32> to vector<8x256xf32>
      %c0_5 = arith.constant 0 : index
      %c0_6 = arith.constant 0 : index
      %12 = vector.load %arg12[%c0_5, %c0_6] : memref<1x256xf32, #tpu.memory_space<vmem>>, vector<1x256xf32>
      %13 = vector.broadcast %12 : vector<1x256xf32> to vector<8x256xf32>
      %14 = arith.mulf %11, %13 : vector<8x256xf32>
      %c0_7 = arith.constant 0 : index
      %c0_8 = arith.constant 0 : index
      %15 = vector.load %arg13[%c0_7, %c0_8] : memref<1x256xf32, #tpu.memory_space<vmem>>, vector<1x256xf32>
      %16 = vector.broadcast %15 : vector<1x256xf32> to vector<8x256xf32>
      %17 = arith.addf %14, %16 : vector<8x256xf32>
      %cst = arith.constant 0.000000e+00 : f32
      %18 = vector.broadcast %cst : f32 to vector<8x256xf32>
      %19 = arith.maximumf %17, %18 : vector<8x256xf32>
      %c0_9 = arith.constant 0 : index
      %c0_10 = arith.constant 0 : index
      %20 = vector.load %arg6[%c0_9, %c0_10] : memref<256x512xf32, #tpu.memory_space<vmem>>, vector<256x512xf32>
      %cst_11 = arith.constant dense<0.000000e+00> : vector<8x512xf32>
      %21 = tpu.matmul %19, %20, %cst_11 {dimension_numbers = #tpu.dot_dimension_numbers<[1], [0], [0], [1], [0, 0, 1, 1], [], []>} : vector<8x256xf32>, vector<256x512xf32>, vector<8x512xf32> -> vector<8x512xf32>
      %c0_12 = arith.constant 0 : index
      %c0_13 = arith.constant 0 : index
      %22 = vector.load %arg7[%c0_12, %c0_13] : memref<1x512xf32, #tpu.memory_space<vmem>>, vector<1x512xf32>
      %23 = vector.broadcast %22 : vector<1x512xf32> to vector<8x512xf32>
      %24 = arith.addf %21, %23 : vector<8x512xf32>
      %c0_14 = arith.constant 0 : index
      %c0_15 = arith.constant 0 : index
      %25 = vector.load %arg8[%c0_14, %c0_15] : memref<8x512xf32, #tpu.memory_space<vmem>>, vector<8x512xf32>
      tpu.vector_store %arg8[%c0_14, %c0_15], %24 {strides = array<i32>} : memref<8x512xf32, #tpu.memory_space<vmem>>, vector<8x512xf32>,
    } else {
    }
    return
  }
  func.func @transform_0(%arg0: i32, %arg1: i32) -> (i32, i32) {
    %c1_i32 = arith.constant 1 : i32
    %0 = arith.subi %c1_i32, %arg0 : i32
    %1 = arith.muli %arg1, %0 : i32
    %c0_i32 = arith.constant 0 : i32
    %c0_i32_0 = arith.constant 0 : i32
    return %1, %c0_i32 : i32, i32
  }
  func.func @transform_1(%arg0: i32, %arg1: i32) -> (i32, i32) {
    %c0_i32 = arith.constant 0 : i32
    %c0_i32_0 = arith.constant 0 : i32
    %c0_i32_1 = arith.constant 0 : i32
    return %c0_i32, %c0_i32_0 : i32, i32
  }
  func.func @transform_2(%arg0: i32, %arg1: i32) -> (i32, i32) {
    %c0_i32 = arith.constant 0 : i32
    %c0_i32_0 = arith.constant 0 : i32
    %c0_i32_1 = arith.constant 0 : i32
    return %c0_i32, %c0_i32_0 : i32, i32
  }
  func.func @transform_3(%arg0: i32, %arg1: i32) -> (i32, i32) {
    %c0_i32 = arith.constant 0 : i32
    %c0_i32_0 = arith.constant 0 : i32
    %c0_i32_1 = arith.constant 0 : i32
    return %c0_i32, %c0_i32_0 : i32, i32
  }
  func.func @transform_4(%arg0: i32, %arg1: i32) -> (i32, i32) {
    %c0_i32 = arith.constant 0 : i32
    %c0_i32_0 = arith.constant 0 : i32
    %c0_i32_1 = arith.constant 0 : i32
    return %c0_i32, %c0_i32_0 : i32, i32
  }
  func.func @transform_5(%arg0: i32, %arg1: i32) -> (i32, i32) {
    %c0_i32 = arith.constant 0 : i32
    %c0_i32_0 = arith.constant 0 : i32
    %c0_i32_1 = arith.constant 0 : i32
    return %c0_i32, %c0_i32_0 : i32, i32
  }
  func.func @transform_6(%arg0: i32, %arg1: i32) -> (i32, i32) {
    %0 = arith.muli %arg1, %arg0 : i32
    %c0_i32 = arith.constant 0 : i32
    %c0_i32_0 = arith.constant 0 : i32
    return %0, %c0_i32 : i32, i32
  }
}

module attributes {stable_mosaic.version = 11 : i64} {
  func.func @_fused_mlp_kernel(%arg0: i32, %arg1: i32, %arg2: memref<8x128xf32, #tpu.memory_space<vmem>>, %arg3: memref<128x256xf32, #tpu.memory_space<vmem>>, %arg4: memref<1x256xf32, #tpu.memory_space<vmem>>, %arg5: memref<1x256xf32, #tpu.memory_space<vmem>>, %arg6: memref<256x512xf32, #tpu.memory_space<vmem>>, %arg7: memref<1x512xf32, #tpu.memory_space<vmem>>, %arg8: memref<8x512xf32, #tpu.memory_space<vmem>>, %arg9: memref<1x8x256xf32, #tpu.memory_space<vmem>>, %arg10: memref<1x256xf32, #tpu.memory_space<vmem>>, %arg11: memref<1x256xf32, #tpu.memory_space<vmem>>, %arg12: memref<1x256xf32, #tpu.memory_space<vmem>>, %arg13: memref<1x256xf32, #tpu.memory_space<vmem>>) attributes {dimension_semantics = [#tpu.dimension_semantics<arbitrary>, #tpu.dimension_semantics<arbitrary>], iteration_bounds = array<i64: 2, 1>, scalar_prefetch = 0 : i64, scratch_operands = 5 : i64, tpu.core_type = #tpu.core_type<tc>, window_params = [{transform_indices = @transform_0, window_bounds = array<i64: 8, 128>}, {pipeline_mode = #tpu.pipeline_mode<synchronous>, transform_indices = @transform_1, window_bounds = array<i64: 128, 256>}, {pipeline_mode = #tpu.pipeline_mode<synchronous>, transform_indices = @transform_2, window_bounds = array<i64: 1, 256>}, {pipeline_mode = #tpu.pipeline_mode<synchronous>, transform_indices = @transform_3, window_bounds = array<i64: 1, 256>}, {pipeline_mode = #tpu.pipeline_mode<synchronous>, transform_indices = @transform_4, window_bounds = array<i64: 256, 512>}, {pipeline_mode = #tpu.pipeline_mode<synchronous>, transform_indices = @transform_5, window_bounds = array<i64: 1, 512>}, {transform_indices = @transform_6, window_bounds = array<i64: 8, 512>}]} {
    %c0_i32 = arith.constant 0 : i32
    %0 = arith.cmpi eq, %arg0, %c0_i32 : i32
    %1 = arith.extui %0 : i1 to i32
    %c0_i32_0 = arith.constant 0 : i32
    %2 = arith.cmpi ne, %1, %c0_i32_0 : i32
    scf.if %2 {
      %c0_i32_2 = arith.constant 0 : i32
      %6 = arith.cmpi eq, %arg1, %c0_i32_2 : i32
      %7 = arith.extui %6 : i1 to i32
      %c0_i32_3 = arith.constant 0 : i32
      %8 = arith.cmpi ne, %7, %c0_i32_3 : i32
      scf.if %8 {
        %cst_19 = arith.constant 0.000000e+00 : f32
        %27 = vector.broadcast %cst_19 : f32 to vector<1x256xf32>
        %c0_20 = arith.constant 0 : index
        %c0_21 = arith.constant 0 : index
        %28 = vector.load %arg10[%c0_20, %c0_21] : memref<1x256xf32, #tpu.memory_space<vmem>>, vector<1x256xf32>
        tpu.vector_store %arg10[%c0_20, %c0_21], %27 {strides = array<i32>} : memref<1x256xf32, #tpu.memory_space<vmem>>, vector<1x256xf32>,
        %cst_22 = arith.constant 0.000000e+00 : f32
        %29 = vector.broadcast %cst_22 : f32 to vector<1x256xf32>
        %c0_23 = arith.constant 0 : index
        %c0_24 = arith.constant 0 : index
        %30 = vector.load %arg11[%c0_23, %c0_24] : memref<1x256xf32, #tpu.memory_space<vmem>>, vector<1x256xf32>
        tpu.vector_store %arg11[%c0_23, %c0_24], %29 {strides = array<i32>} : memref<1x256xf32, #tpu.memory_space<vmem>>, vector<1x256xf32>,
      } else {
      }
      %c0 = arith.constant 0 : index
      %c0_4 = arith.constant 0 : index
      %9 = vector.load %arg2[%c0, %c0_4] : memref<8x128xf32, #tpu.memory_space<vmem>>, vector<8x128xf32>
      %c0_5 = arith.constant 0 : index
      %c0_6 = arith.constant 0 : index
      %10 = vector.load %arg3[%c0_5, %c0_6] : memref<128x256xf32, #tpu.memory_space<vmem>>, vector<128x256xf32>
      %cst = arith.constant dense<0.000000e+00> : vector<8x256xf32>
      %11 = tpu.matmul %9, %10, %cst {dimension_numbers = #tpu.dot_dimension_numbers<[1], [0], [0], [1], [0, 0, 1, 1], [], []>} : vector<8x128xf32>, vector<128x256xf32>, vector<8x256xf32> -> vector<8x256xf32>
      %12 = arith.index_cast %arg1 : i32 to index
      %c0_7 = arith.constant 0 : index
      %c0_8 = arith.constant 0 : index
      %13 = vector.load %arg9[%12, %c0_7, %c0_8] : memref<1x8x256xf32, #tpu.memory_space<vmem>>, vector<1x8x256xf32>
      %14 = vector.shape_cast %13 : vector<1x8x256xf32> to vector<8x256xf32>
      %15 = vector.shape_cast %11 : vector<8x256xf32> to vector<1x8x256xf32>
      tpu.vector_store %arg9[%12, %c0_7, %c0_8], %15 {strides = array<i32>} : memref<1x8x256xf32, #tpu.memory_space<vmem>>, vector<1x8x256xf32>,
      %c0_9 = arith.constant 0 : index
      %c0_10 = arith.constant 0 : index
      %16 = vector.load %arg10[%c0_9, %c0_10] : memref<1x256xf32, #tpu.memory_space<vmem>>, vector<1x256xf32>
      %cst_11 = arith.constant dense<0.000000e+00> : vector<256xf32>
      %17 = vector.multi_reduction <add>, %11, %cst_11 [0] : vector<8x256xf32> to vector<256xf32>
      %18 = vector.shape_cast %17 : vector<256xf32> to vector<1x256xf32>
      %19 = arith.addf %16, %18 : vector<1x256xf32>
      %c0_12 = arith.constant 0 : index
      %c0_13 = arith.constant 0 : index
      %20 = vector.load %arg10[%c0_12, %c0_13] : memref<1x256xf32, #tpu.memory_space<vmem>>, vector<1x256xf32>
      tpu.vector_store %arg10[%c0_12, %c0_13], %19 {strides = array<i32>} : memref<1x256xf32, #tpu.memory_space<vmem>>, vector<1x256xf32>,
      %c0_14 = arith.constant 0 : index
      %c0_15 = arith.constant 0 : index
      %21 = vector.load %arg11[%c0_14, %c0_15] : memref<1x256xf32, #tpu.memory_space<vmem>>, vector<1x256xf32>
      %22 = arith.mulf %11, %11 : vector<8x256xf32>
      %cst_16 = arith.constant dense<0.000000e+00> : vector<256xf32>
      %23 = vector.multi_reduction <add>, %22, %cst_16 [0] : vector<8x256xf32> to vector<256xf32>
      %24 = vector.shape_cast %23 : vector<256xf32> to vector<1x256xf32>
      %25 = arith.addf %21, %24 : vector<1x256xf32>
      %c0_17 = arith.constant 0 : index
      %c0_18 = arith.constant 0 : index
      %26 = vector.load %arg11[%c0_17, %c0_18] : memref<1x256xf32, #tpu.memory_space<vmem>>, vector<1x256xf32>
      tpu.vector_store %arg11[%c0_17, %c0_18], %25 {strides = array<i32>} : memref<1x256xf32, #tpu.memory_space<vmem>>, vector<1x256xf32>,
    } else {
    }
    %c1_i32 = arith.constant 1 : i32
    %3 = arith.cmpi eq, %arg0, %c1_i32 : i32
    %4 = arith.extui %3 : i1 to i32
    %c0_i32_1 = arith.constant 0 : i32
    %5 = arith.cmpi ne, %4, %c0_i32_1 : i32
    scf.if %5 {
      %c0_i32_2 = arith.constant 0 : i32
      %6 = arith.cmpi eq, %arg1, %c0_i32_2 : i32
      %7 = arith.extui %6 : i1 to i32
      %c0_i32_3 = arith.constant 0 : i32
      %8 = arith.cmpi ne, %7, %c0_i32_3 : i32
      scf.if %8 {
        %c0_16 = arith.constant 0 : index
        %c0_17 = arith.constant 0 : index
        %26 = vector.load %arg10[%c0_16, %c0_17] : memref<1x256xf32, #tpu.memory_space<vmem>>, vector<1x256xf32>
        %cst_18 = arith.constant 1.250000e-01 : f32
        %27 = vector.broadcast %cst_18 : f32 to vector<1x256xf32>
        %28 = arith.mulf %26, %27 : vector<1x256xf32>
        %c0_19 = arith.constant 0 : index
        %c0_20 = arith.constant 0 : index
        %29 = vector.load %arg11[%c0_19, %c0_20] : memref<1x256xf32, #tpu.memory_space<vmem>>, vector<1x256xf32>
        %cst_21 = arith.constant 1.250000e-01 : f32
        %30 = vector.broadcast %cst_21 : f32 to vector<1x256xf32>
        %31 = arith.mulf %29, %30 : vector<1x256xf32>
        %32 = arith.mulf %28, %28 : vector<1x256xf32>
        %33 = arith.subf %31, %32 : vector<1x256xf32>
        %cst_22 = arith.constant 0.000000e+00 : f32
        %34 = vector.broadcast %cst_22 : f32 to vector<1x256xf32>
        %35 = arith.maximumf %33, %34 : vector<1x256xf32>
        %c0_23 = arith.constant 0 : index
        %c0_24 = arith.constant 0 : index
        %36 = vector.load %arg4[%c0_23, %c0_24] : memref<1x256xf32, #tpu.memory_space<vmem>>, vector<1x256xf32>
        %cst_25 = arith.constant 9.99999974E-6 : f32
        %37 = vector.broadcast %cst_25 : f32 to vector<1x256xf32>
        %38 = arith.addf %35, %37 : vector<1x256xf32>
        %39 = math.rsqrt %38 : vector<1x256xf32>
        %40 = arith.mulf %36, %39 : vector<1x256xf32>
        %c0_26 = arith.constant 0 : index
        %c0_27 = arith.constant 0 : index
        %41 = vector.load %arg12[%c0_26, %c0_27] : memref<1x256xf32, #tpu.memory_space<vmem>>, vector<1x256xf32>
        tpu.vector_store %arg12[%c0_26, %c0_27], %40 {strides = array<i32>} : memref<1x256xf32, #tpu.memory_space<vmem>>, vector<1x256xf32>,
        %c0_28 = arith.constant 0 : index
        %c0_29 = arith.constant 0 : index
        %42 = vector.load %arg5[%c0_28, %c0_29] : memref<1x256xf32, #tpu.memory_space<vmem>>, vector<1x256xf32>
        %43 = arith.mulf %28, %40 : vector<1x256xf32>
        %44 = arith.subf %42, %43 : vector<1x256xf32>
        %c0_30 = arith.constant 0 : index
        %c0_31 = arith.constant 0 : index
        %45 = vector.load %arg13[%c0_30, %c0_31] : memref<1x256xf32, #tpu.memory_space<vmem>>, vector<1x256xf32>
        tpu.vector_store %arg13[%c0_30, %c0_31], %44 {strides = array<i32>} : memref<1x256xf32, #tpu.memory_space<vmem>>, vector<1x256xf32>,
      } else {
      }
      %9 = arith.index_cast %arg1 : i32 to index
      %c0 = arith.constant 0 : index
      %c0_4 = arith.constant 0 : index
      %10 = vector.load %arg9[%9, %c0, %c0_4] : memref<1x8x256xf32, #tpu.memory_space<vmem>>, vector<1x8x256xf32>
      %11 = vector.shape_cast %10 : vector<1x8x256xf32> to vector<8x256xf32>
      %c0_5 = arith.constant 0 : index
      %c0_6 = arith.constant 0 : index
      %12 = vector.load %arg12[%c0_5, %c0_6] : memref<1x256xf32, #tpu.memory_space<vmem>>, vector<1x256xf32>
      %13 = vector.broadcast %12 : vector<1x256xf32> to vector<8x256xf32>
      %14 = arith.mulf %11, %13 : vector<8x256xf32>
      %c0_7 = arith.constant 0 : index
      %c0_8 = arith.constant 0 : index
      %15 = vector.load %arg13[%c0_7, %c0_8] : memref<1x256xf32, #tpu.memory_space<vmem>>, vector<1x256xf32>
      %16 = vector.broadcast %15 : vector<1x256xf32> to vector<8x256xf32>
      %17 = arith.addf %14, %16 : vector<8x256xf32>
      %cst = arith.constant 0.000000e+00 : f32
      %18 = vector.broadcast %cst : f32 to vector<8x256xf32>
      %19 = arith.maximumf %17, %18 : vector<8x256xf32>
      %c0_9 = arith.constant 0 : index
      %c0_10 = arith.constant 0 : index
      %20 = vector.load %arg6[%c0_9, %c0_10] : memref<256x512xf32, #tpu.memory_space<vmem>>, vector<256x512xf32>
      %cst_11 = arith.constant dense<0.000000e+00> : vector<8x512xf32>
      %21 = tpu.matmul %19, %20, %cst_11 {dimension_numbers = #tpu.dot_dimension_numbers<[1], [0], [0], [1], [0, 0, 1, 1], [], []>} : vector<8x256xf32>, vector<256x512xf32>, vector<8x512xf32> -> vector<8x512xf32>
      %c0_12 = arith.constant 0 : index
      %c0_13 = arith.constant 0 : index
      %22 = vector.load %arg7[%c0_12, %c0_13] : memref<1x512xf32, #tpu.memory_space<vmem>>, vector<1x512xf32>
      %23 = vector.broadcast %22 : vector<1x512xf32> to vector<8x512xf32>
      %24 = arith.addf %21, %23 : vector<8x512xf32>
      %c0_14 = arith.constant 0 : index
      %c0_15 = arith.constant 0 : index
      %25 = vector.load %arg8[%c0_14, %c0_15] : memref<8x512xf32, #tpu.memory_space<vmem>>, vector<8x512xf32>
      tpu.vector_store %arg8[%c0_14, %c0_15], %24 {strides = array<i32>} : memref<8x512xf32, #tpu.memory_space<vmem>>, vector<8x512xf32>,
    } else {
    }
    return
  }
  func.func @transform_0(%arg0: i32, %arg1: i32) -> (i32, i32) {
    %c1_i32 = arith.constant 1 : i32
    %0 = arith.subi %c1_i32, %arg0 : i32
    %1 = arith.muli %arg1, %0 : i32
    %c0_i32 = arith.constant 0 : i32
    %c0_i32_0 = arith.constant 0 : i32
    return %1, %c0_i32 : i32, i32
  }
  func.func @transform_1(%arg0: i32, %arg1: i32) -> (i32, i32) {
    %c0_i32 = arith.constant 0 : i32
    %c0_i32_0 = arith.constant 0 : i32
    %c0_i32_1 = arith.constant 0 : i32
    return %c0_i32, %c0_i32_0 : i32, i32
  }
  func.func @transform_2(%arg0: i32, %arg1: i32) -> (i32, i32) {
    %c0_i32 = arith.constant 0 : i32
    %c0_i32_0 = arith.constant 0 : i32
    %c0_i32_1 = arith.constant 0 : i32
    return %c0_i32, %c0_i32_0 : i32, i32
  }
  func.func @transform_3(%arg0: i32, %arg1: i32) -> (i32, i32) {
    %c0_i32 = arith.constant 0 : i32
    %c0_i32_0 = arith.constant 0 : i32
    %c0_i32_1 = arith.constant 0 : i32
    return %c0_i32, %c0_i32_0 : i32, i32
  }
  func.func @transform_4(%arg0: i32, %arg1: i32) -> (i32, i32) {
    %c0_i32 = arith.constant 0 : i32
    %c0_i32_0 = arith.constant 0 : i32
    %c0_i32_1 = arith.constant 0 : i32
    return %c0_i32, %c0_i32_0 : i32, i32
  }
  func.func @transform_5(%arg0: i32, %arg1: i32) -> (i32, i32) {
    %c0_i32 = arith.constant 0 : i32
    %c0_i32_0 = arith.constant 0 : i32
    %c0_i32_1 = arith.constant 0 : i32
    return %c0_i32, %c0_i32_0 : i32, i32
  }
  func.func @transform_6(%arg0: i32, %arg1: i32) -> (i32, i32) {
    %0 = arith.muli %arg1, %arg0 : i32
    %c0_i32 = arith.constant 0 : i32
    %c0_i32_0 = arith.constant 0 : i32
    return %0, %c0_i32 : i32, i32
  }
}

</mosaic_0001>

<bundles_post_ra>
// kernel: forward.1
= control target key start
LH: loop header
LB: loop body
LE: loop exit
PB: predicated region body
PF: predicated region fallthrough
CT: control target
= control target key end

     0   :  { %11 = vsyncpa [#allocation8], 0  ;;  %s1540_s0 = inlined_call_operand.vmem [shape: f32[8,128], index: 0, kind: input, shape index: {}]   ;;  %s1541_s1 = inlined_call_operand.hbm [shape: f32[128,256], index: 1, kind: input, shape index: {}]   ;;  %s1542_s2 = inlined_call_operand.vmem [shape: f32[1,256], index: 2, kind: input, shape index: {}]   ;;  %s1543_s3 = inlined_call_operand.vmem [shape: f32[1,256], index: 3, kind: input, shape index: {}]   ;;  %s1544_s4 = inlined_call_operand.hbm [shape: f32[256,512], index: 4, kind: input, shape index: {}]   ;;  %s1545_s5 = inlined_call_operand.vmem [shape: f32[1,512], index: 5, kind: input, shape index: {}]   ;;  %s1546_s6 = inlined_call_operand.hbm [shape: f32[8,512], index: 6, kind: output, shape index: {}]  }
   0x1   :  { %12 = vsyncpa [#allocation11], 0 }
   0x2   :  { %13 = vsyncpa [#allocation9], 0 }
   0x3   :  { %15 = vsyncpa [#allocation9 + $0x1], 0  ;;  %s1372_s21 = smov 0   ;;  %s1374_s22 = smov 0  }
   0x4   :  { %s1376_s23 = smov 0  }
   0x5 LB: > { %s969_s24 = sadd.s32 4294967295, %s1326_s23   ;;  %s970_s25 = sadd.s32 4294967294, %s1326_s23   ;;  %s1326_s23 = sphi %s1376_s23, %s21_s23   ;;  %s1322_s22 = sphi %s1374_s22, %s1559_s22   ;;  %s1318_s21 = sphi %s1372_s21, %s1558_s21  }
   0x6   : > { %s33_s26 = sadd.s32 1, %s1322_s22  ;;  %p971_p0 = scmp.ge.s32.totalorder %s1326_s23, 1 }
   0x7   : > { %p35_p1 = scmp.ge.s32.totalorder %s33_s26, 2  ;;  %p201_p2 = scmp.lt.s32.totalorder %s1326_s23, 3 }
   0x8   : > { %p1394_p3 = scmp.eq.s32.totalorder %s969_s24, 0  ;;  %s1328_s29 = smov [#allocation7]  }
   0x9   : > { %s1561_s26 = smov (%p35_p1, %s33_s26), 0  ;;  %p1400_p4 = pnand %p971_p0, %p201_p2 }
   0xa   : > { %s1550_s27 = scalar_select %p1394_p3, 1, 0 }
   0xb   : > { %s1551_s28 = scalar_select %p1400_p4, 1, 0 }
   0xc   : > { %s213_s30 = sshll.u32 %s1328_s29, 4  ;;  %p1157_p5 = pneg %p1400_p4  ;;  %s214_s30 = int_to_ptr.vmem [resolvable:$true] %s213_s30 }
   0xd   : > { %s1329_s8 = smov [#allocation10]   ;;  %s1210_s12 = scalar_lea.hbm %s1541_s1, 4096 }
   0xe   : > { %p1408_p6 = pnand %p1394_p3, %p1157_p5  ;;  %s232_s9 = sshll.u32 %s1329_s8, 4  ;;  %s1412_s9 = int_to_ptr.vmem [resolvable:$true] %s232_s9 }
   0xf   : > { %p1211_p7 = scmp.ne.s32.totalorder %s1541_s1, %s1210_s12  ;;  %p1217_p11 = scmp.lt.u32.totalorder %s1210_s12, %s1541_s1 }
  0x10   : > { %p1212_p8 = pneg %p1408_p6 }
  0x12   : > { %p1213_p9 = pnand %p1212_p8, %p1211_p7 }
  0x14   : > { %p1214_p10 = pneg %p1213_p9 }
  0x16   : > { %p1219_p12 = pnand %p1217_p11, %p1214_p10 }
  0x18   : > { %1222 = shalt.err (!%p1219_p12)
}
  0x19   : > { %s1223_s17 = scalar_lea.vmem %s214_s30, 4096  ;;  %p1231_p2 = scmp.lt.s32.totalorder %s214_s30, %s214_s30 }
  0x1a   : > { %p1224_p13 = scmp.ne.s32.totalorder %s214_s30, %s1223_s17  ;;  %p1232_p5 = scmp.lt.s32.totalorder %s1223_s17, %s1223_s17 }
  0x1c   : > { %p1226_p0 = pnand %p1224_p13, %p1212_p8  ;;  %p1233_p3 = por %p1232_p5, %p1231_p2 }
  0x1e   : > { %p1227_p1 = pneg %p1226_p0 }
  0x20   : > { %p1234_p4 = pnand %p1233_p3, %p1227_p1 }
  0x22   : > { %1237 = shalt.err (!%p1234_p4)
}
  0x23   : > { %s1330_s18 = smov 256   ;;  %s1331_s19 = smov 16  }
  0x24   : > { %1160 = dma.hbm_to_vmem [thread:$0]  (!%p1408_p6), %s1541_s1, 4096, %s214_s30, [#allocation8], %s1330_s18, %s1330_s18, %s1331_s19  }
  0x25   : > { %s1238_s11 = scalar_lea.hbm %s1544_s4, 16384 }
  0x26   : > { %p1239_p7 = scmp.ne.s32.totalorder %s1544_s4, %s1238_s11  ;;  %p1245_p9 = scmp.lt.u32.totalorder %s1238_s11, %s1544_s4 }
  0x28   : > { %p1241_p3 = pnand %p1239_p7, %p1212_p8 }
  0x2a   : > { %p1242_p4 = pneg %p1241_p3 }
  0x2c   : > { %p1247_p10 = pnand %p1245_p9, %p1242_p4 }
  0x2e   : > { %1250 = shalt.err (!%p1247_p10)
}
  0x2f   : > { %s1251_s30 = scalar_lea.vmem %s1412_s9, 16384  ;;  %p1259_p0 = scmp.lt.s32.totalorder %s1412_s9, %s1412_s9 }
  0x30   : > { %p1252_p11 = scmp.ne.s32.totalorder %s1412_s9, %s1251_s30  ;;  %p1260_p1 = scmp.lt.s32.totalorder %s1251_s30, %s1251_s30 }
  0x32   : > { %p1254_p12 = pnand %p1252_p11, %p1212_p8  ;;  %p1261_p2 = por %p1260_p1, %p1259_p0 }
  0x34   : > { %p1255_p13 = pneg %p1254_p12 }
  0x36   : > { %p1262_p5 = pnand %p1261_p2, %p1255_p13 }
  0x38   : > { %1265 = shalt.err (!%p1262_p5)
}
  0x39   : > { %s1332_s16 = smov 512   ;;  %s1333_s17 = smov 32  }
  0x3a   : > { %1163 = dma.hbm_to_vmem [thread:$0]  (!%p1408_p6), %s1544_s4, 16384, %s1412_s9, [#allocation11], %s1332_s16, %s1332_s16, %s1333_s17  }
  0x3b   : > { %p1553_p7 = scmp.ne.s32.totalorder %s1551_s28, 0 }
  0x3c   : > { %p1554_p8 = scmp.ne.s32.totalorder (!%p1553_p7), %s1550_s27, 0 }
  0x3d   : > { %262 = sbr.rel (%p1553_p7) target bundleno = 658 (0x292), region = 44 }
  0x44   : > { %1305 = dma.done.wait (%p1554_p8), [#allocation8], 4096  }
  0x45   : > { %1307 = vsyncadd (%p1554_p8), [#allocation8], 4294963200 }
  0x46   : > { %1309 = dma.done.wait (%p1554_p8), [#allocation11], 16384  }
  0x47   : > { %1311 = vsyncadd (%p1554_p8), [#allocation11], 4294950912  ;;  %p979_p3 = scmp.ne.s32.totalorder %s1318_s21, 0 }
  0x48   : > { %v322_v0 = vld [vmem:[#allocation7 + $0x8] sm:$0xff] (!%p979_p3)  ;;  %v324_v1 = vld [vmem:[#allocation7 + $0x18] sm:$0xff] (!%p979_p3)  ;;  %v321_v2 = vld [vmem:[#allocation7] sm:$0xff] (!%p979_p3)  ;;  %v314_v3 = vlaneseq (!%p979_p3)  ;;  %v1334_v8 = vmov (!%p979_p3), 0.0   ;;  %v1335_v60 = vmov (!%p979_p3), 1966171168  }
  0x49   : > { %309 = sbr.rel (%p979_p3) target bundleno = 343 (0x157), region = 56  ;;  %v985_v4 = vpack.c.bf16 (!%p979_p3), %v324_v1, %v322_v0  ;;  %v323_v5 = vld [vmem:[#allocation7 + $0x10] sm:$0xff] (!%p979_p3)  ;;  %v326_v6 = vld [vmem:[#allocation7 + $0x28] sm:$0xff] (!%p979_p3)  ;;  %v328_v7 = vld [vmem:[#allocation7 + $0x38] sm:$0xff] (!%p979_p3)  ;;  %417 = vmatprep.mubr.f32.mxu0 (!%p979_p3), %v1334_v8  ;;  %v446_v61 = vunpack.c.l.s4 (!%p979_p3), %v1335_v60 }
  0x4a   : > { %v987_v9 = vpack.c.bf16 (!%p979_p3), %v323_v5, %v321_v2  ;;  %v989_v10 = vpack.c.bf16 (!%p979_p3), %v328_v7, %v326_v6  ;;  %v325_v11 = vld [vmem:[#allocation7 + $0x20] sm:$0xff] (!%p979_p3)  ;;  %v327_v12 = vld [vmem:[#allocation7 + $0x30] sm:$0xff] (!%p979_p3)  ;;  %v330_v13 = vld [vmem:[#allocation7 + $0x48] sm:$0xff] (!%p979_p3)  ;;  %vm1473_vm0 = vcmp.lt.s32.totalorder (!%p979_p3), %v314_v3, 256 }
  0x4b   : > { %986 = vmatprep.subr.bf16.mxu0 (!%p979_p3), %v985_v4  ;;  %v332_v15 = vld [vmem:[#allocation7 + $0x58] sm:$0xff] (!%p979_p3)  ;;  %318 = vst.msk [vmem:[#allocation3] sm:$0x3] (!%p979_p3), %vm1473_vm0, %v1334_v8  ;;  %319 = vst.msk [vmem:[#allocation4] sm:$0x3] (!%p979_p3), %vm1473_vm0, %v1334_v8  ;;  %v991_v16 = vpack.c.bf16 (!%p979_p3), %v327_v12, %v325_v11  ;;  %v329_v18 = vld [vmem:[#allocation7 + $0x40] sm:$0xff] (!%p979_p3)  ;;  %v447_v7 = vunpack.c.0.s8 (!%p979_p3), %v446_v61 }
  0x4c   : > { %988 = vmatpush1.bf16.msra.mxu0 (!%p979_p3), %v987_v9  ;;  %v993_v17 = vpack.c.bf16 (!%p979_p3), %v332_v15, %v330_v13  ;;  %v331_v19 = vld [vmem:[#allocation7 + $0x50] sm:$0xff] (!%p979_p3)  ;;  %v334_v20 = vld [vmem:[#allocation7 + $0x68] sm:$0xff] (!%p979_p3)  ;;  %v336_v21 = vld [vmem:[#allocation7 + $0x78] sm:$0xff] (!%p979_p3)  ;;  %v449_v8 = vshrl.u32 (!%p979_p3), %v314_v3, 7 }
  0x4d   : > { %990 = vmatprep.subr.bf16.mxu0 (!%p979_p3), %v989_v10  ;;  %v995_v22 = vpack.c.bf16 (!%p979_p3), %v331_v19, %v329_v18  ;;  %v997_v23 = vpack.c.bf16 (!%p979_p3), %v336_v21, %v334_v20  ;;  %v333_v24 = vld [vmem:[#allocation7 + $0x60] sm:$0xff] (!%p979_p3)  ;;  %v335_v25 = vld [vmem:[#allocation7 + $0x70] sm:$0xff] (!%p979_p3)  ;;  %v338_v26 = vld [vmem:[#allocation7 + $0x88] sm:$0xff] (!%p979_p3) }
  0x4e   : > { %v340_v27 = vld [vmem:[#allocation7 + $0x98] sm:$0xff] (!%p979_p3)  ;;  %v999_v28 = vpack.c.bf16 (!%p979_p3), %v335_v25, %v333_v24  ;;  %v337_v30 = vld [vmem:[#allocation7 + $0x80] sm:$0xff] (!%p979_p3)  ;;  %v339_v31 = vld [vmem:[#allocation7 + $0x90] sm:$0xff] (!%p979_p3)  ;;  %v450_v18 = vsub.s32 (!%p979_p3), %v447_v7, %v449_v8 }
  0x4f   : > { %v1001_v29 = vpack.c.bf16 (!%p979_p3), %v340_v27, %v338_v26  ;;  %v342_v32 = vld [vmem:[#allocation7 + $0xa8] sm:$0xff] (!%p979_p3)  ;;  %v344_v33 = vld [vmem:[#allocation7 + $0xb8] sm:$0xff] (!%p979_p3)  ;;  %v1003_v34 = vpack.c.bf16 (!%p979_p3), %v339_v31, %v337_v30  ;;  %v341_v36 = vld [vmem:[#allocation7 + $0xa0] sm:$0xff] (!%p979_p3) }
  0x50   : > { %992 = vmatpush1.bf16.msra.mxu0 %v991_v16  ;;  %v1005_v35 = vpack.c.bf16 %v344_v33, %v342_v32  ;;  %v343_v37 = vld [vmem:[#allocation7 + $0xb0] sm:$0xff]  ;;  %v346_v38 = vld [vmem:[#allocation7 + $0xc8] sm:$0xff]  ;;  %v348_v39 = vld [vmem:[#allocation7 + $0xd8] sm:$0xff] }
  0x51   : > { %994 = vmatprep.subr.bf16.mxu0 %v993_v17  ;;  %v1007_v40 = vpack.c.bf16 %v343_v37, %v341_v36  ;;  %v1009_v41 = vpack.c.bf16 %v348_v39, %v346_v38  ;;  %v345_v42 = vld [vmem:[#allocation7 + $0xc0] sm:$0xff]  ;;  %v347_v43 = vld [vmem:[#allocation7 + $0xd0] sm:$0xff]  ;;  %v350_v44 = vld [vmem:[#allocation7 + $0xe8] sm:$0xff] }
  0x52   : > { %v352_v45 = vld [vmem:[#allocation7 + $0xf8] sm:$0xff]  ;;  %v1011_v46 = vpack.c.bf16 %v347_v43, %v345_v42  ;;  %v349_v48 = vld [vmem:[#allocation7 + $0xe0] sm:$0xff]  ;;  %v351_v49 = vld [vmem:[#allocation7 + $0xf0] sm:$0xff] }
  0x53   : > { %v1013_v47 = vpack.c.bf16 %v352_v45, %v350_v44  ;;  %v1015_v50 = vpack.c.bf16 %v351_v49, %v349_v48  ;;  %v320_v51 = vld [vmem:[%s1540_s0] sm:$0xff]  ;;  %v429_v26 = vld [vmem:[#allocation3] sm:$0x3]  ;;  %v466_v3 = vld [vmem:[#allocation4] sm:$0x3] }
  0x54   : > { %996 = vmatpush1.bf16.msra.mxu0 %v995_v22 }
  0x55   : > { %998 = vmatprep.subr.bf16.mxu0 %v997_v23 }
  0x58   : > { %1000 = vmatpush1.bf16.msra.mxu0 %v999_v28 }
  0x59   : > { %1002 = vmatprep.subr.bf16.mxu0 %v1001_v29 }
  0x5c   : > { %1004 = vmatpush1.bf16.msra.mxu0 %v1003_v34 }
  0x5d   : > { %1006 = vmatprep.subr.bf16.mxu0 %v1005_v35 }
  0x60   : > { %1008 = vmatpush1.bf16.msra.mxu0 %v1007_v40 }
  0x61   : > { %1010 = vmatprep.subr.bf16.mxu0 %v1009_v41 }
  0x64   : > { %1012 = vmatpush1.bf16.msra.mxu0 %v1011_v46 }
  0x65   : > { %1014 = vmatprep.subr.bf16.mxu0 %v1013_v47 }
  0x68   : > { %1016 = vmatpush1.bf16.msra.mxu0 %v1015_v50 }
  0x6b   : > { %418 = vmatmul.mubr.f32.vlgmr.msra.gmra.mrb[0].mxu0 %v320_v51 }
 0x13e   : > { %v419_v52 = vpop.f32.mrb[0].mxu0 }
 0x13f   : > { %427 = vst [vmem:[#allocation2] sm:$0xff] %v419_v52  ;;  %v430_v53 = vrot.slane %v419_v52, 4  ;;  %v467_v54 = vmul.f32 %v419_v52, %v419_v52  ;;  %v421_v55 = vpop.f32.mrb[1].mxu0 }
 0x140   : > { %428 = vst [vmem:[#allocation2 + $0x8] sm:$0xff] %v421_v55  ;;  %v436_v56 = vrot.slane %v421_v55, 4  ;;  %v468_v57 = vmul.f32 %v421_v55, %v421_v55 }
 0x141   : > { %v431_v58 = vadd.f32 %v430_v53, %v419_v52  ;;  %v469_v59 = vrot.slane %v467_v54, 4 }
 0x142   : > { %v437_v62 = vadd.f32 %v436_v56, %v421_v55  ;;  %v475_v63 = vrot.slane %v468_v57, 4 }
 0x143   : > { %v432_v0 = vrot.slane %v431_v58, 2  ;;  %v470_v1 = vadd.f32 %v469_v59, %v467_v54 }
 0x144   : > { %v438_v2 = vrot.slane %v437_v62, 2  ;;  %v476_v4 = vadd.f32 %v475_v63, %v468_v57 }
 0x145   : > { %v433_v5 = vadd.f32 %v432_v0, %v431_v58  ;;  %v471_v6 = vrot.slane %v470_v1, 2 }
 0x146   : > { %v439_v9 = vadd.f32 %v438_v2, %v437_v62  ;;  %v477_v10 = vrot.slane %v476_v4, 2 }
 0x147   : > { %v434_v11 = vrot.slane %v433_v5, 1  ;;  %v472_v12 = vadd.f32 %v471_v6, %v470_v1 }
 0x148   : > { %v440_v13 = vrot.slane %v439_v9, 1  ;;  %v478_v15 = vadd.f32 %v477_v10, %v476_v4 }
 0x149   : > { %v435_v16 = vadd.f32 %v434_v11, %v433_v5  ;;  %v473_v17 = vrot.slane %v472_v12, 1 }
 0x14a   : > { %v441_v19 = vadd.f32 %v440_v13, %v439_v9  ;;  %v479_v20 = vrot.slane %v478_v15, 1 }
 0x14b   : > { %v474_v21 = vadd.f32 %v473_v17, %v472_v12 }
 0x14c   : > { %v444_v22 = vcombine.low %v435_v16, %v441_v19  ;;  %v480_v23 = vadd.f32 %v479_v20, %v478_v15 }
 0x14e   : > { %v451_v24 = vrot.slane %v444_v22, %v450_v18  ;;  %v483_v25 = vcombine.low %v474_v21, %v480_v23 }
 0x150   : > { %v458_v27 = vrot.slane %v451_v24, %v450_v18  ;;  %v490_v28 = vrot.slane %v483_v25, %v450_v18 }
 0x152   : > { %v460_v29 = vadd.f32 %v458_v27, %v429_v26  ;;  %v497_v30 = vrot.slane %v490_v28, %v450_v18 }
 0x154   : > { %465 = vst.msk [vmem:[#allocation3] sm:$0x3] %vm1473_vm0, %v460_v29  ;;  %v499_v31 = vadd.f32 %v497_v30, %v466_v3 }
 0x156   : > { %500 = vst.msk [vmem:[#allocation4] sm:$0x3] %vm1473_vm0, %v499_v31 }
 0x157 PF: > { %p980_p6 = scmp.ne.s32.totalorder %s1318_s21, 1 }
 0x158   : > { %v565_v32 = vld [vmem:[#allocation10 + $0x8] sm:$0xff] (!%p980_p6)  ;;  %v567_v34 = vld [vmem:[#allocation10 + $0x18] sm:$0xff] (!%p980_p6)  ;;  %v564_v37 = vld [vmem:[#allocation10] sm:$0xff] (!%p980_p6) }
 0x159   : > { %504 = sbr.rel (%p980_p6) target bundleno = 635 (0x27b), region = 64  ;;  %v569_v33 = vld [vmem:[#allocation10 + $0x28] sm:$0xff] (!%p980_p6)  ;;  %v571_v36 = vld [vmem:[#allocation10 + $0x38] sm:$0xff] (!%p980_p6)  ;;  %v568_v38 = vld [vmem:[#allocation10 + $0x20] sm:$0xff] (!%p980_p6) }
 0x15a   : > { %v1017_v35 = vpack.c.bf16 (!%p980_p6), %v569_v33, %v565_v32  ;;  %v1081_v39 = vpack.c.bf16 (!%p980_p6), %v571_v36, %v567_v34  ;;  %v1019_v40 = vpack.c.bf16 (!%p980_p6), %v568_v38, %v564_v37  ;;  %v566_v41 = vld [vmem:[#allocation10 + $0x10] sm:$0xff] (!%p980_p6)  ;;  %v573_v43 = vld [vmem:[#allocation10 + $0x48] sm:$0xff] (!%p980_p6)  ;;  %v575_v45 = vld [vmem:[#allocation10 + $0x58] sm:$0xff] (!%p980_p6) }
 0x15b   : > { %v570_v42 = vld [vmem:[#allocation10 + $0x30] sm:$0xff] (!%p980_p6)  ;;  %v577_v14 = vld [vmem:[#allocation10 + $0x68] sm:$0xff] (!%p980_p6)  ;;  %v579_v46 = vld [vmem:[#allocation10 + $0x78] sm:$0xff] (!%p980_p6) }
 0x15c   : > { %1018 = vmatprep.subr.bf16.mxu0 (!%p980_p6), %v1017_v35  ;;  %v1083_v44 = vpack.c.bf16 (!%p980_p6), %v570_v42, %v566_v41  ;;  %1082 = vmatprep.subr.bf16.mxu1 (!%p980_p6), %v1081_v39  ;;  %v1021_v47 = vpack.c.bf16 (!%p980_p6), %v577_v14, %v573_v43  ;;  %v1085_v48 = vpack.c.bf16 (!%p980_p6), %v579_v46, %v575_v45  ;;  %v572_v49 = vld [vmem:[#allocation10 + $0x40] sm:$0xff] (!%p980_p6)  ;;  %v574_v51 = vld [vmem:[#allocation10 + $0x50] sm:$0xff] (!%p980_p6)  ;;  %v581_v54 = vld [vmem:[#allocation10 + $0x88] sm:$0xff] (!%p980_p6) }
 0x15d   : > { %1020 = vmatpush1.bf16.msra.mxu0 (!%p980_p6), %v1019_v40  ;;  %v576_v50 = vld [vmem:[#allocation10 + $0x60] sm:$0xff] (!%p980_p6)  ;;  %v578_v53 = vld [vmem:[#allocation10 + $0x70] sm:$0xff] (!%p980_p6)  ;;  %v585_v55 = vld [vmem:[#allocation10 + $0xa8] sm:$0xff] (!%p980_p6) }
 0x15e   : > { %1084 = vmatpush1.bf16.msra.mxu1 (!%p980_p6), %v1083_v44  ;;  %v1023_v52 = vpack.c.bf16 (!%p980_p6), %v576_v50, %v572_v49  ;;  %1022 = vmatprep.subr.bf16.mxu0 (!%p980_p6), %v1021_v47  ;;  %v1087_v56 = vpack.c.bf16 (!%p980_p6), %v578_v53, %v574_v51  ;;  %v1025_v57 = vpack.c.bf16 (!%p980_p6), %v585_v55, %v581_v54  ;;  %v583_v58 = vld [vmem:[#allocation10 + $0x98] sm:$0xff] (!%p980_p6)  ;;  %v580_v60 = vld [vmem:[#allocation10 + $0x80] sm:$0xff] (!%p980_p6)  ;;  %v582_v63 = vld [vmem:[#allocation10 + $0x90] sm:$0xff] (!%p980_p6) }
 0x15f   : > { %1086 = vmatprep.subr.bf16.mxu1 (!%p980_p6), %v1085_v48  ;;  %v587_v59 = vld [vmem:[#allocation10 + $0xb8] sm:$0xff] (!%p980_p6)  ;;  %v584_v62 = vld [vmem:[#allocation10 + $0xa0] sm:$0xff] (!%p980_p6)  ;;  %v586_v0 = vld [vmem:[#allocation10 + $0xb0] sm:$0xff] (!%p980_p6) }
 0x160   : > { %v1089_v61 = vpack.c.bf16 %v587_v59, %v583_v58  ;;  %v1027_v1 = vpack.c.bf16 %v584_v62, %v580_v60  ;;  %v589_v2 = vld [vmem:[#allocation10 + $0xc8] sm:$0xff]  ;;  %v591_v5 = vld [vmem:[#allocation10 + $0xd8] sm:$0xff]  ;;  %v1091_v6 = vpack.c.bf16 %v586_v0, %v582_v63  ;;  %v588_v9 = vld [vmem:[#allocation10 + $0xc0] sm:$0xff] }
 0x161   : > { %1024 = vmatpush1.bf16.msra.mxu0 %v1023_v52  ;;  %v593_v4 = vld [vmem:[#allocation10 + $0xe8] sm:$0xff]  ;;  %v595_v8 = vld [vmem:[#allocation10 + $0xf8] sm:$0xff]  ;;  %v592_v10 = vld [vmem:[#allocation10 + $0xe0] sm:$0xff] }
 0x162   : > { %1088 = vmatpush1.bf16.msra.mxu1 %v1087_v56  ;;  %1026 = vmatprep.subr.bf16.mxu0 %v1025_v57  ;;  %v1029_v7 = vpack.c.bf16 %v593_v4, %v589_v2  ;;  %v1093_v11 = vpack.c.bf16 %v595_v8, %v591_v5  ;;  %v590_v12 = vld [vmem:[#allocation10 + $0xd0] sm:$0xff]  ;;  %v597_v15 = vld [vmem:[#allocation10 + $0x108] sm:$0xff]  ;;  %v599_v17 = vld [vmem:[#allocation10 + $0x118] sm:$0xff]  ;;  %v1031_v19 = vpack.c.bf16 %v592_v10, %v588_v9 }
 0x163   : > { %1090 = vmatprep.subr.bf16.mxu1 %v1089_v61  ;;  %v594_v13 = vld [vmem:[#allocation10 + $0xf0] sm:$0xff]  ;;  %v601_v16 = vld [vmem:[#allocation10 + $0x128] sm:$0xff]  ;;  %v603_v18 = vld [vmem:[#allocation10 + $0x138] sm:$0xff] }
 0x164   : > { %v1095_v20 = vpack.c.bf16 %v594_v13, %v590_v12  ;;  %v1033_v21 = vpack.c.bf16 %v601_v16, %v597_v15  ;;  %v596_v22 = vld [vmem:[#allocation10 + $0x100] sm:$0xff]  ;;  %v598_v24 = vld [vmem:[#allocation10 + $0x110] sm:$0xff]  ;;  %v1097_v25 = vpack.c.bf16 %v603_v18, %v599_v17  ;;  %v605_v27 = vld [vmem:[#allocation10 + $0x148] sm:$0xff] }
 0x165   : > { %1028 = vmatpush1.bf16.msra.mxu0 %v1027_v1  ;;  %v600_v23 = vld [vmem:[#allocation10 + $0x120] sm:$0xff]  ;;  %v602_v26 = vld [vmem:[#allocation10 + $0x130] sm:$0xff]  ;;  %v609_v28 = vld [vmem:[#allocation10 + $0x168] sm:$0xff] }
 0x166   : > { %1092 = vmatpush1.bf16.msra.mxu1 %v1091_v6  ;;  %1030 = vmatprep.subr.bf16.mxu0 %v1029_v7  ;;  %v607_v3 = vld [vmem:[#allocation10 + $0x158] sm:$0xff]  ;;  %v1035_v30 = vpack.c.bf16 %v600_v23, %v596_v22  ;;  %v1099_v31 = vpack.c.bf16 %v602_v26, %v598_v24  ;;  %v1037_v32 = vpack.c.bf16 %v609_v28, %v605_v27  ;;  %v604_v33 = vld [vmem:[#allocation10 + $0x140] sm:$0xff]  ;;  %v606_v35 = vld [vmem:[#allocation10 + $0x150] sm:$0xff] }
 0x167   : > { %1094 = vmatprep.subr.bf16.mxu1 %v1093_v11  ;;  %v611_v29 = vld [vmem:[#allocation10 + $0x178] sm:$0xff]  ;;  %v608_v34 = vld [vmem:[#allocation10 + $0x160] sm:$0xff]  ;;  %v610_v37 = vld [vmem:[#allocation10 + $0x170] sm:$0xff] }
 0x168   : > { %v1101_v36 = vpack.c.bf16 %v611_v29, %v607_v3  ;;  %v613_v38 = vld [vmem:[#allocation10 + $0x188] sm:$0xff]  ;;  %v615_v40 = vld [vmem:[#allocation10 + $0x198] sm:$0xff]  ;;  %v1039_v42 = vpack.c.bf16 %v608_v34, %v604_v33  ;;  %v1103_v43 = vpack.c.bf16 %v610_v37, %v606_v35  ;;  %v612_v14 = vld [vmem:[#allocation10 + $0x180] sm:$0xff] }
 0x169   : > { %1032 = vmatpush1.bf16.msra.mxu0 %v1031_v19  ;;  %v617_v39 = vld [vmem:[#allocation10 + $0x1a8] sm:$0xff]  ;;  %v619_v41 = vld [vmem:[#allocation10 + $0x1b8] sm:$0xff]  ;;  %v616_v45 = vld [vmem:[#allocation10 + $0x1a0] sm:$0xff] }
 0x16a   : > { %1096 = vmatpush1.bf16.msra.mxu1 %v1095_v20  ;;  %1034 = vmatprep.subr.bf16.mxu0 %v1033_v21  ;;  %v1041_v44 = vpack.c.bf16 %v617_v39, %v613_v38  ;;  %v614_v46 = vld [vmem:[#allocation10 + $0x190] sm:$0xff]  ;;  %v1105_v47 = vpack.c.bf16 %v619_v41, %v615_v40  ;;  %v621_v49 = vld [vmem:[#allocation10 + $0x1c8] sm:$0xff]  ;;  %v623_v51 = vld [vmem:[#allocation10 + $0x1d8] sm:$0xff]  ;;  %v1043_v53 = vpack.c.bf16 %v616_v45, %v612_v14 }
 0x16b   : > { %1098 = vmatprep.subr.bf16.mxu1 %v1097_v25  ;;  %v618_v48 = vld [vmem:[#allocation10 + $0x1b0] sm:$0xff]  ;;  %v625_v50 = vld [vmem:[#allocation10 + $0x1e8] sm:$0xff]  ;;  %v627_v52 = vld [vmem:[#allocation10 + $0x1f8] sm:$0xff] }
 0x16c   : > { %v1107_v54 = vpack.c.bf16 %v618_v48, %v614_v46  ;;  %v1045_v55 = vpack.c.bf16 %v625_v50, %v621_v49  ;;  %v620_v56 = vld [vmem:[#allocation10 + $0x1c0] sm:$0xff]  ;;  %v622_v58 = vld [vmem:[#allocation10 + $0x1d0] sm:$0xff]  ;;  %v1109_v59 = vpack.c.bf16 %v627_v52, %v623_v51  ;;  %v629_v61 = vld [vmem:[#allocation10 + $0x208] sm:$0xff] }
 0x16d   : > { %1036 = vmatpush1.bf16.msra.mxu0 %v1035_v30  ;;  %v624_v57 = vld [vmem:[#allocation10 + $0x1e0] sm:$0xff]  ;;  %v626_v60 = vld [vmem:[#allocation10 + $0x1f0] sm:$0xff]  ;;  %v633_v62 = vld [vmem:[#allocation10 + $0x228] sm:$0xff] }
 0x16e   : > { %1100 = vmatpush1.bf16.msra.mxu1 %v1099_v31  ;;  %1038 = vmatprep.subr.bf16.mxu0 %v1037_v32  ;;  %v631_v63 = vld [vmem:[#allocation10 + $0x218] sm:$0xff]  ;;  %v1047_v1 = vpack.c.bf16 %v624_v57, %v620_v56  ;;  %v1111_v2 = vpack.c.bf16 %v626_v60, %v622_v58  ;;  %v1049_v4 = vpack.c.bf16 %v633_v62, %v629_v61  ;;  %v628_v5 = vld [vmem:[#allocation10 + $0x200] sm:$0xff]  ;;  %v630_v7 = vld [vmem:[#allocation10 + $0x210] sm:$0xff] }
 0x16f   : > { %1102 = vmatprep.subr.bf16.mxu1 %v1101_v36  ;;  %v635_v0 = vld [vmem:[#allocation10 + $0x238] sm:$0xff]  ;;  %v632_v6 = vld [vmem:[#allocation10 + $0x220] sm:$0xff]  ;;  %v634_v9 = vld [vmem:[#allocation10 + $0x230] sm:$0xff] }
 0x170   : > { %v1113_v8 = vpack.c.bf16 %v635_v0, %v631_v63  ;;  %v637_v10 = vld [vmem:[#allocation10 + $0x248] sm:$0xff]  ;;  %v639_v12 = vld [vmem:[#allocation10 + $0x258] sm:$0xff]  ;;  %v1051_v15 = vpack.c.bf16 %v632_v6, %v628_v5  ;;  %v1115_v16 = vpack.c.bf16 %v634_v9, %v630_v7  ;;  %v636_v18 = vld [vmem:[#allocation10 + $0x240] sm:$0xff] }
 0x171   : > { %1040 = vmatpush1.bf16.msra.mxu0 %v1039_v42  ;;  %v641_v11 = vld [vmem:[#allocation10 + $0x268] sm:$0xff]  ;;  %v643_v13 = vld [vmem:[#allocation10 + $0x278] sm:$0xff]  ;;  %v640_v19 = vld [vmem:[#allocation10 + $0x260] sm:$0xff] }
 0x172   : > { %1104 = vmatpush1.bf16.msra.mxu1 %v1103_v43  ;;  %1042 = vmatprep.subr.bf16.mxu0 %v1041_v44  ;;  %v1053_v17 = vpack.c.bf16 %v641_v11, %v637_v10  ;;  %v638_v20 = vld [vmem:[#allocation10 + $0x250] sm:$0xff]  ;;  %v1117_v21 = vpack.c.bf16 %v643_v13, %v639_v12  ;;  %v645_v23 = vld [vmem:[#allocation10 + $0x288] sm:$0xff]  ;;  %v647_v25 = vld [vmem:[#allocation10 + $0x298] sm:$0xff]  ;;  %v1055_v27 = vpack.c.bf16 %v640_v19, %v636_v18 }
 0x173   : > { %1106 = vmatprep.subr.bf16.mxu1 %v1105_v47  ;;  %v642_v22 = vld [vmem:[#allocation10 + $0x270] sm:$0xff]  ;;  %v649_v24 = vld [vmem:[#allocation10 + $0x2a8] sm:$0xff]  ;;  %v651_v26 = vld [vmem:[#allocation10 + $0x2b8] sm:$0xff] }
 0x174   : > { %v1119_v28 = vpack.c.bf16 %v642_v22, %v638_v20  ;;  %v1057_v3 = vpack.c.bf16 %v649_v24, %v645_v23  ;;  %v644_v29 = vld [vmem:[#allocation10 + $0x280] sm:$0xff]  ;;  %v646_v31 = vld [vmem:[#allocation10 + $0x290] sm:$0xff]  ;;  %v1121_v32 = vpack.c.bf16 %v651_v26, %v647_v25  ;;  %v653_v34 = vld [vmem:[#allocation10 + $0x2c8] sm:$0xff] }
 0x175   : > { %1044 = vmatpush1.bf16.msra.mxu0 %v1043_v53  ;;  %v648_v30 = vld [vmem:[#allocation10 + $0x2a0] sm:$0xff]  ;;  %v650_v33 = vld [vmem:[#allocation10 + $0x2b0] sm:$0xff]  ;;  %v657_v35 = vld [vmem:[#allocation10 + $0x2e8] sm:$0xff] }
 0x176   : > { %1108 = vmatpush1.bf16.msra.mxu1 %v1107_v54  ;;  %1046 = vmatprep.subr.bf16.mxu0 %v1045_v55  ;;  %v655_v36 = vld [vmem:[#allocation10 + $0x2d8] sm:$0xff]  ;;  %v1059_v38 = vpack.c.bf16 %v648_v30, %v644_v29  ;;  %v652_v39 = vld [vmem:[#allocation10 + $0x2c0] sm:$0xff]  ;;  %v1123_v40 = vpack.c.bf16 %v650_v33, %v646_v31  ;;  %v1061_v41 = vpack.c.bf16 %v657_v35, %v653_v34  ;;  %v654_v43 = vld [vmem:[#allocation10 + $0x2d0] sm:$0xff] }
 0x177   : > { %1110 = vmatprep.subr.bf16.mxu1 %v1109_v59  ;;  %v659_v37 = vld [vmem:[#allocation10 + $0x2f8] sm:$0xff]  ;;  %v656_v42 = vld [vmem:[#allocation10 + $0x2e0] sm:$0xff]  ;;  %v658_v44 = vld [vmem:[#allocation10 + $0x2f0] sm:$0xff] }
 0x178   : > { %v1125_v14 = vpack.c.bf16 %v659_v37, %v655_v36  ;;  %v661_v45 = vld [vmem:[#allocation10 + $0x308] sm:$0xff]  ;;  %v509_v47 = vld [vmem:[#allocation3] sm:$0x3]  ;;  %v511_v51 = vld [vmem:[#allocation4] sm:$0x3]  ;;  %v1063_v52 = vpack.c.bf16 %v656_v42, %v652_v39  ;;  %v1127_v54 = vpack.c.bf16 %v658_v44, %v654_v43 }
 0x179   : > { %1048 = vmatpush1.bf16.msra.mxu0 %v1047_v1  ;;  %v665_v46 = vld [vmem:[#allocation10 + $0x328] sm:$0xff]  ;;  %v663_v48 = vld [vmem:[#allocation10 + $0x318] sm:$0xff]  ;;  %v1490_v50 = vmul.f32 0.125, %v509_v47  ;;  %v512_v53 = vmul.f32 0.125, %v511_v51  ;;  %v660_v56 = vld [vmem:[#allocation10 + $0x300] sm:$0xff] }
 0x17a   : > { %1112 = vmatpush1.bf16.msra.mxu1 %v1111_v2  ;;  %1050 = vmatprep.subr.bf16.mxu0 %v1049_v4  ;;  %v667_v49 = vld [vmem:[#allocation10 + $0x338] sm:$0xff]  ;;  %v1065_v55 = vpack.c.bf16 %v665_v46, %v661_v45  ;;  %v664_v57 = vld [vmem:[#allocation10 + $0x320] sm:$0xff]  ;;  %v662_v58 = vld [vmem:[#allocation10 + $0x310] sm:$0xff] }
 0x17b   : > { %1114 = vmatprep.subr.bf16.mxu1 %v1113_v8  ;;  %v513_v59 = vmul.f32 %v1490_v50, %v1490_v50  ;;  %v1129_v60 = vpack.c.bf16 %v667_v49, %v663_v48  ;;  %v666_v61 = vld [vmem:[#allocation10 + $0x330] sm:$0xff]  ;;  %v669_v62 = vld [vmem:[#allocation10 + $0x348] sm:$0xff]  ;;  %v671_v0 = vld [vmem:[#allocation10 + $0x358] sm:$0xff]  ;;  %v1067_v4 = vpack.c.bf16 %v664_v57, %v660_v56 }
 0x17c   : > { %v673_v63 = vld [vmem:[#allocation10 + $0x368] sm:$0xff]  ;;  %v675_v1 = vld [vmem:[#allocation10 + $0x378] sm:$0xff]  ;;  %v1131_v5 = vpack.c.bf16 %v666_v61, %v662_v58  ;;  %v668_v7 = vld [vmem:[#allocation10 + $0x340] sm:$0xff] }
 0x17d   : > { %1052 = vmatpush1.bf16.msra.mxu0 %v1051_v15  ;;  %v514_v2 = vsub.f32 %v512_v53, %v513_v59  ;;  %v1069_v6 = vpack.c.bf16 %v673_v63, %v669_v62  ;;  %v672_v8 = vld [vmem:[#allocation10 + $0x360] sm:$0xff]  ;;  %v670_v9 = vld [vmem:[#allocation10 + $0x350] sm:$0xff]  ;;  %v1133_v11 = vpack.c.bf16 %v675_v1, %v671_v0  ;;  %v677_v13 = vld [vmem:[#allocation10 + $0x388] sm:$0xff] }
 0x17e   : > { %1116 = vmatpush1.bf16.msra.mxu1 %v1115_v16  ;;  %1054 = vmatprep.subr.bf16.mxu0 %v1053_v17  ;;  %v674_v12 = vld [vmem:[#allocation10 + $0x370] sm:$0xff]  ;;  %v681_v15 = vld [vmem:[#allocation10 + $0x3a8] sm:$0xff]  ;;  %v679_v16 = vld [vmem:[#allocation10 + $0x398] sm:$0xff]  ;;  %v1071_v19 = vpack.c.bf16 %v672_v8, %v668_v7 }
 0x17f   : > { %1118 = vmatprep.subr.bf16.mxu1 %v1117_v21  ;;  %v515_v10 = vmax.f32 %v514_v2, 0.0  ;;  %v683_v17 = vld [vmem:[#allocation10 + $0x3b8] sm:$0xff]  ;;  %v1135_v20 = vpack.c.bf16 %v674_v12, %v670_v9  ;;  %v1073_v21 = vpack.c.bf16 %v681_v15, %v677_v13  ;;  %v676_v22 = vld [vmem:[#allocation10 + $0x380] sm:$0xff]  ;;  %v678_v24 = vld [vmem:[#allocation10 + $0x390] sm:$0xff] }
 0x180   : > { %v680_v23 = vld [vmem:[#allocation10 + $0x3a0] sm:$0xff]  ;;  %v1137_v25 = vpack.c.bf16 %v683_v17, %v679_v16  ;;  %v682_v26 = vld [vmem:[#allocation10 + $0x3b0] sm:$0xff]  ;;  %v691_v29 = vld [vmem:[#allocation10 + $0x3f8] sm:$0xff] }
 0x181   : > { %1056 = vmatpush1.bf16.msra.mxu0 %v1055_v27  ;;  %v517_v18 = vadd.f32 1e-05, %v515_v10  ;;  %v685_v27 = vld [vmem:[#allocation10 + $0x3c8] sm:$0xff]  ;;  %v1075_v30 = vpack.c.bf16 %v680_v23, %v676_v22  ;;  %v1139_v31 = vpack.c.bf16 %v682_v26, %v678_v24  ;;  %v684_v33 = vld [vmem:[#allocation10 + $0x3c0] sm:$0xff]  ;;  %v686_v36 = vld [vmem:[#allocation10 + $0x3d0] sm:$0xff] }
 0x182   : > { %1120 = vmatpush1.bf16.msra.mxu1 %v1119_v28  ;;  %1058 = vmatprep.subr.bf16.mxu0 %v1057_v3  ;;  %v689_v28 = vld [vmem:[#allocation10 + $0x3e8] sm:$0xff]  ;;  %v687_v3 = vld [vmem:[#allocation10 + $0x3d8] sm:$0xff]  ;;  %v688_v34 = vld [vmem:[#allocation10 + $0x3e0] sm:$0xff] }
 0x183   : > { %1122 = vmatprep.subr.bf16.mxu1 %v1121_v32  ;;  %1208 = vrsqrt.f32 %v517_v18  ;;  %v1077_v32 = vpack.c.bf16 %v689_v28, %v685_v27  ;;  %v1141_v35 = vpack.c.bf16 %v691_v29, %v687_v3  ;;  %v690_v37 = vld [vmem:[#allocation10 + $0x3f0] sm:$0xff]  ;;  %v1079_v39 = vpack.c.bf16 %v688_v34, %v684_v33  ;;  %v525_v44 = vld [vmem:[%s1543_s3] sm:$0x3] }
 0x184   : > { %v533_v49 = vld [vmem:[#allocation2 + $0x8] sm:$0xff]  ;;  %v692_v0 = vld [vmem:[%s1545_s5] sm:$0xf] }
 0x185   : > { %1060 = vmatpush1.bf16.msra.mxu0 %v1059_v38  ;;  %v520_v38 = vlaneseq }
 0x186   : > { %1124 = vmatpush1.bf16.msra.mxu1 %v1123_v40  ;;  %1062 = vmatprep.subr.bf16.mxu0 %v1061_v41  ;;  %v1143_v40 = vpack.c.bf16 %v690_v37, %v686_v36  ;;  %v516_v41 = vld [vmem:[%s1542_s2] sm:$0x3] }
 0x187   : > { %1126 = vmatprep.subr.bf16.mxu1 %v1125_v14  ;;  %vm522_vm1 = vcmp.lt.s32.totalorder %v520_v38, 256  ;;  %v537_v45 = vshrl.u32 %v520_v38, 7 }
 0x189   : > { %1064 = vmatpush1.bf16.msra.mxu0 %v1063_v52  ;;  %v538_v47 = vsub.s32 0, %v537_v45  ;;  %v542_v48 = vsub.s32 1, %v537_v45  ;;  %v532_v52 = vld [vmem:[#allocation2] sm:$0xff]  ;;  %v708_v1 = vsub.s32 3, %v537_v45 }
 0x18a   : > { %1128 = vmatpush1.bf16.msra.mxu1 %v1127_v54  ;;  %1066 = vmatprep.subr.bf16.mxu0 %v1065_v55 }
 0x18b   : > { %1130 = vmatprep.subr.bf16.mxu1 %v1129_v60  ;;  %v697_v2 = vrot.slane %v692_v0, %v538_v47 }
 0x18d   : > { %1068 = vmatpush1.bf16.msra.mxu0 %v1067_v4  ;;  %v1209_v42 = vpop.eup %1208 }
 0x18e   : > { %1132 = vmatpush1.bf16.msra.mxu1 %v1131_v5  ;;  %1070 = vmatprep.subr.bf16.mxu0 %v1069_v6  ;;  %v519_v43 = vmul.f32 %v1209_v42, %v516_v41  ;;  %v701_v5 = vrot.slane %v692_v0, %v542_v48  ;;  %v709_v6 = vrot.slane %v692_v0, %v708_v1 }
 0x18f   : > { %1134 = vmatprep.subr.bf16.mxu1 %v1133_v11 }
 0x190   : > { %524 = vst.msk [vmem:[#allocation5] sm:$0x3] %vm522_vm1, %v519_v43  ;;  %v526_v14 = vmul.f32 %v519_v43, %v1490_v50  ;;  %v704_v50 = vsub.s32 2, %v537_v45 }
 0x191   : > { %1072 = vmatpush1.bf16.msra.mxu0 %v1071_v19 }
 0x192   : > { %1136 = vmatpush1.bf16.msra.mxu1 %v1135_v20  ;;  %1074 = vmatprep.subr.bf16.mxu0 %v1073_v21  ;;  %v527_v46 = vsub.f32 %v525_v44, %v526_v14  ;;  %v705_v4 = vrot.slane %v692_v0, %v704_v50 }
 0x193   : > { %1138 = vmatprep.subr.bf16.mxu1 %v1137_v25 }
 0x194   : > { %528 = vst.msk [vmem:[#allocation6] sm:$0x3] %vm522_vm1, %v527_v46 }
 0x195   : > { %1076 = vmatpush1.bf16.msra.mxu0 %v1075_v30 }
 0x196   : > { %1140 = vmatpush1.bf16.msra.mxu1 %v1139_v31  ;;  %1078 = vmatprep.subr.bf16.mxu0 %v1077_v32 }
 0x197   : > { %1142 = vmatprep.subr.bf16.mxu1 %v1141_v35  ;;  %v534_v51 = vld [vmem:[#allocation5] sm:$0x3] }
 0x198   : > { %v539_v53 = vrot.slane %v534_v51, %v538_v47  ;;  %v543_v54 = vrot.slane %v534_v51, %v542_v48 }
 0x199   : > { %1080 = vmatpush1.bf16.msra.mxu0 %v1079_v39 }
 0x19a   : > { %1144 = vmatpush1.bf16.msra.mxu1 %v1143_v40  ;;  %v547_v55 = vmul.f32 %v543_v54, %v533_v49  ;;  %v546_v56 = vmul.f32 %v539_v53, %v532_v52 }
 0x19b   : > { %v548_v57 = vld [vmem:[#allocation6] sm:$0x3] }
 0x19c   : > { %v553_v58 = vrot.slane %v548_v57, %v538_v47  ;;  %v557_v59 = vrot.slane %v548_v57, %v542_v48 }
 0x19e   : > { %v561_v60 = vadd.f32 %v557_v59, %v547_v55  ;;  %v560_v61 = vadd.f32 %v553_v58, %v546_v56 }
 0x1a0   : > { %v563_v62 = vmax.f32 %v561_v60, 0.0  ;;  %v562_v63 = vmax.f32 %v560_v61, 0.0 }
 0x1a2   : > { %778 = vmatprep.mubr.f32.mxu0 %v563_v62  ;;  %849 = vmatprep.mubr.f32.mxu1 %v563_v62 }
 0x1a3   : > { %779 = vmatmul.mubr.f32.vlgmr.msra.gmra.mrb[0].mxu0 %v562_v63  ;;  %850 = vmatmul.mubr.f32.vlgmr.msra.gmra.mrb[0].mxu1 %v562_v63 }
 0x276   : > { %v780_v7 = vpop.f32.mrb[0].mxu0  ;;  %v851_v8 = vpop.f32.mrb[0].mxu1 }
 0x277   : > { %v781_v9 = vadd.f32 %v780_v7, %v697_v2  ;;  %v852_v10 = vadd.f32 %v851_v8, %v705_v4  ;;  %v782_v11 = vpop.f32.mrb[1].mxu0  ;;  %v853_v12 = vpop.f32.mrb[1].mxu1 }
 0x278   : > { %v783_v13 = vadd.f32 %v782_v11, %v701_v5  ;;  %v854_v15 = vadd.f32 %v853_v12, %v709_v6 }
 0x279   : > { %856 = vst [vmem:[#allocation12] sm:$0xff] %v781_v9  ;;  %858 = vst [vmem:[#allocation12 + $0x10] sm:$0xff] %v852_v10 }
 0x27a   : > { %857 = vst [vmem:[#allocation12 + $0x8] sm:$0xff] %v783_v13  ;;  %859 = vst [vmem:[#allocation12 + $0x18] sm:$0xff] %v854_v15 }
 0x27b PF: > { %p1506_p4 = scmp.eq.s32.totalorder %s969_s24, 1  ;;  %s1336_s11 = smov [#allocation12]  }
 0x27c   : > { %s876_s12 = sshll.u32 %s1336_s11, 4  ;;  %s877_s12 = int_to_ptr.vmem [resolvable:$true] %s876_s12 }
 0x27d   : > { %s1266_s13 = scalar_lea.vmem %s877_s12, 512  ;;  %s1272_s14 = scalar_lea.vmem %s877_s12, 1024 }
 0x27e   : > { %p1267_p9 = scmp.ne.s32.totalorder %s877_s12, %s1266_s13  ;;  %p1273_p12 = scmp.lt.s32.totalorder %s877_s12, %s877_s12 }
 0x27f   : > { %p1274_p13 = scmp.lt.s32.totalorder %s1272_s14, %s1266_s13 }
 0x280   : > { %p1268_p10 = pnand %p1267_p9, %p1506_p4 }
 0x281   : > { %p1275_p0 = por %p1274_p13, %p1273_p12 }
 0x282   : > { %p1269_p11 = pneg %p1268_p10 }
 0x284   : > { %p1276_p1 = pnand %p1275_p0, %p1269_p11 }
 0x286   : > { %1279 = shalt.err (!%p1276_p1)
}
 0x287   : > { %s1280_s30 = scalar_lea.hbm %s1546_s6, 512 }
 0x288   : > { %p1281_p2 = scmp.ne.s32.totalorder %s1546_s6, %s1280_s30  ;;  %p1286_p8 = scmp.lt.u32.totalorder %s1280_s30, %s1546_s6 }
 0x28a   : > { %p1282_p5 = pnand %p1281_p2, %p1506_p4 }
 0x28c   : > { %p1283_p7 = pneg %p1282_p5 }
 0x28e   : > { %p1288_p3 = pnand %p1286_p8, %p1283_p7 }
 0x290   : > { %1291 = shalt.err (!%p1288_p3)
}
 0x291   : > { %1154 = dma.vmem_to_hbm [thread:$0]  (%p1506_p4), %s877_s12, 512, %s1546_s6, [#allocation9]  }
 0x292 PF: > { %p1173_p6 = scmp.ge.s32.totalorder %s1326_s23, 2  ;;  %p1174_p9 = scmp.eq.s32.totalorder %s970_s25, 1 }
 0x294   : > { %p1165_p10 = pnand %p1174_p9, %p1173_p6 }
 0x296   : > { %1313 = dma.done.wait (!%p1165_p10), [#allocation9], 512  }
 0x297   : > { %1315 = vsyncadd (!%p1165_p10), [#allocation9], 4294966784  ;;  %s21_s23 = sadd.s32 1, %s1326_s23   ;;  %s1558_s21 = smov %s1322_s22 }
 0x298   : > { %p18_p11 = scmp.ge.s32.totalorder %s21_s23, 4   ;;  %s1559_s22 = smov %s1561_s26 }
 0x29a   :  { %20 = sbr.rel (!%p18_p11) target bundleno = 5 (0x5), region = 106 }
 0x2a1   :  { %894 = vsyncpa [#allocation8], 1 }
 0x2a2   :  { %896 = vsyncpa [#allocation8 + $0x1], 1 }
 0x2a3   :  { %897 = vsyncpa [#allocation11], 1 }
 0x2a4   :  { %898 = vsyncpa [#allocation9], 1 }
 0x2a5   :  { %900 = vsyncpa [#allocation9 + $0x1], 1 }

// kernel: forward.1
= control target key start
LH: loop header
LB: loop body
LE: loop exit
PB: predicated region body
PF: predicated region fallthrough
CT: control target
= control target key end

     0   :  { %11 = vsyncpa [#allocation8], 0  ;;  %s1540_s0 = inlined_call_operand.vmem [shape: f32[8,128], index: 0, kind: input, shape index: {}]   ;;  %s1541_s1 = inlined_call_operand.hbm [shape: f32[128,256], index: 1, kind: input, shape index: {}]   ;;  %s1542_s2 = inlined_call_operand.vmem [shape: f32[1,256], index: 2, kind: input, shape index: {}]   ;;  %s1543_s3 = inlined_call_operand.vmem [shape: f32[1,256], index: 3, kind: input, shape index: {}]   ;;  %s1544_s4 = inlined_call_operand.hbm [shape: f32[256,512], index: 4, kind: input, shape index: {}]   ;;  %s1545_s5 = inlined_call_operand.vmem [shape: f32[1,512], index: 5, kind: input, shape index: {}]   ;;  %s1546_s6 = inlined_call_operand.hbm [shape: f32[8,512], index: 6, kind: output, shape index: {}]  }
   0x1   :  { %12 = vsyncpa [#allocation11], 0 }
   0x2   :  { %13 = vsyncpa [#allocation9], 0 }
   0x3   :  { %15 = vsyncpa [#allocation9 + $0x1], 0  ;;  %s1372_s21 = smov 0   ;;  %s1374_s22 = smov 0  }
   0x4   :  { %s1376_s23 = smov 0  }
   0x5 LB: > { %s969_s24 = sadd.s32 4294967295, %s1326_s23   ;;  %s970_s25 = sadd.s32 4294967294, %s1326_s23   ;;  %s1326_s23 = sphi %s1376_s23, %s21_s23   ;;  %s1322_s22 = sphi %s1374_s22, %s1559_s22   ;;  %s1318_s21 = sphi %s1372_s21, %s1558_s21  }
   0x6   : > { %s33_s26 = sadd.s32 1, %s1322_s22  ;;  %p971_p0 = scmp.ge.s32.totalorder %s1326_s23, 1 }
   0x7   : > { %p35_p1 = scmp.ge.s32.totalorder %s33_s26, 2  ;;  %p201_p2 = scmp.lt.s32.totalorder %s1326_s23, 3 }
   0x8   : > { %p1394_p3 = scmp.eq.s32.totalorder %s969_s24, 0  ;;  %s1328_s29 = smov [#allocation7]  }
   0x9   : > { %s1561_s26 = smov (%p35_p1, %s33_s26), 0  ;;  %p1400_p4 = pnand %p971_p0, %p201_p2 }
   0xa   : > { %s1550_s27 = scalar_select %p1394_p3, 1, 0 }
   0xb   : > { %s1551_s28 = scalar_select %p1400_p4, 1, 0 }
   0xc   : > { %s213_s30 = sshll.u32 %s1328_s29, 4  ;;  %p1157_p5 = pneg %p1400_p4  ;;  %s214_s30 = int_to_ptr.vmem [resolvable:$true] %s213_s30 }
   0xd   : > { %s1329_s8 = smov [#allocation10]   ;;  %s1210_s12 = scalar_lea.hbm %s1541_s1, 4096 }
   0xe   : > { %p1408_p6 = pnand %p1394_p3, %p1157_p5  ;;  %s232_s9 = sshll.u32 %s1329_s8, 4  ;;  %s1412_s9 = int_to_ptr.vmem [resolvable:$true] %s232_s9 }
   0xf   : > { %p1211_p7 = scmp.ne.s32.totalorder %s1541_s1, %s1210_s12  ;;  %p1217_p11 = scmp.lt.u32.totalorder %s1210_s12, %s1541_s1 }
  0x10   : > { %p1212_p8 = pneg %p1408_p6 }
  0x12   : > { %p1213_p9 = pnand %p1212_p8, %p1211_p7 }
  0x14   : > { %p1214_p10 = pneg %p1213_p9 }
  0x16   : > { %p1219_p12 = pnand %p1217_p11, %p1214_p10 }
  0x18   : > { %1222 = shalt.err (!%p1219_p12)
}
  0x19   : > { %s1223_s17 = scalar_lea.vmem %s214_s30, 4096  ;;  %p1231_p2 = scmp.lt.s32.totalorder %s214_s30, %s214_s30 }
  0x1a   : > { %p1224_p13 = scmp.ne.s32.totalorder %s214_s30, %s1223_s17  ;;  %p1232_p5 = scmp.lt.s32.totalorder %s1223_s17, %s1223_s17 }
  0x1c   : > { %p1226_p0 = pnand %p1224_p13, %p1212_p8  ;;  %p1233_p3 = por %p1232_p5, %p1231_p2 }
  0x1e   : > { %p1227_p1 = pneg %p1226_p0 }
  0x20   : > { %p1234_p4 = pnand %p1233_p3, %p1227_p1 }
  0x22   : > { %1237 = shalt.err (!%p1234_p4)
}
  0x23   : > { %s1330_s18 = smov 256   ;;  %s1331_s19 = smov 16  }
  0x24   : > { %1160 = dma.hbm_to_vmem [thread:$0]  (!%p1408_p6), %s1541_s1, 4096, %s214_s30, [#allocation8], %s1330_s18, %s1330_s18, %s1331_s19  }
  0x25   : > { %s1238_s11 = scalar_lea.hbm %s1544_s4, 16384 }
  0x26   : > { %p1239_p7 = scmp.ne.s32.totalorder %s1544_s4, %s1238_s11  ;;  %p1245_p9 = scmp.lt.u32.totalorder %s1238_s11, %s1544_s4 }
  0x28   : > { %p1241_p3 = pnand %p1239_p7, %p1212_p8 }
  0x2a   : > { %p1242_p4 = pneg %p1241_p3 }
  0x2c   : > { %p1247_p10 = pnand %p1245_p9, %p1242_p4 }
  0x2e   : > { %1250 = shalt.err (!%p1247_p10)
}
  0x2f   : > { %s1251_s30 = scalar_lea.vmem %s1412_s9, 16384  ;;  %p1259_p0 = scmp.lt.s32.totalorder %s1412_s9, %s1412_s9 }
  0x30   : > { %p1252_p11 = scmp.ne.s32.totalorder %s1412_s9, %s1251_s30  ;;  %p1260_p1 = scmp.lt.s32.totalorder %s1251_s30, %s1251_s30 }
  0x32   : > { %p1254_p12 = pnand %p1252_p11, %p1212_p8  ;;  %p1261_p2 = por %p1260_p1, %p1259_p0 }
  0x34   : > { %p1255_p13 = pneg %p1254_p12 }
  0x36   : > { %p1262_p5 = pnand %p1261_p2, %p1255_p13 }
  0x38   : > { %1265 = shalt.err (!%p1262_p5)
}
  0x39   : > { %s1332_s16 = smov 512   ;;  %s1333_s17 = smov 32  }
  0x3a   : > { %1163 = dma.hbm_to_vmem [thread:$0]  (!%p1408_p6), %s1544_s4, 16384, %s1412_s9, [#allocation11], %s1332_s16, %s1332_s16, %s1333_s17  }
  0x3b   : > { %p1553_p7 = scmp.ne.s32.totalorder %s1551_s28, 0 }
  0x3c   : > { %p1554_p8 = scmp.ne.s32.totalorder (!%p1553_p7), %s1550_s27, 0 }
  0x3d   : > { %262 = sbr.rel (%p1553_p7) target bundleno = 658 (0x292), region = 44 }
  0x44   : > { %1305 = dma.done.wait (%p1554_p8), [#allocation8], 4096  }
  0x45   : > { %1307 = vsyncadd (%p1554_p8), [#allocation8], 4294963200 }
  0x46   : > { %1309 = dma.done.wait (%p1554_p8), [#allocation11], 16384  }
  0x47   : > { %1311 = vsyncadd (%p1554_p8), [#allocation11], 4294950912  ;;  %p979_p3 = scmp.ne.s32.totalorder %s1318_s21, 0 }
  0x48   : > { %v322_v0 = vld [vmem:[#allocation7 + $0x8] sm:$0xff] (!%p979_p3)  ;;  %v324_v1 = vld [vmem:[#allocation7 + $0x18] sm:$0xff] (!%p979_p3)  ;;  %v321_v2 = vld [vmem:[#allocation7] sm:$0xff] (!%p979_p3)  ;;  %v314_v3 = vlaneseq (!%p979_p3)  ;;  %v1334_v8 = vmov (!%p979_p3), 0.0   ;;  %v1335_v60 = vmov (!%p979_p3), 1966171168  }
  0x49   : > { %309 = sbr.rel (%p979_p3) target bundleno = 343 (0x157), region = 56  ;;  %v985_v4 = vpack.c.bf16 (!%p979_p3), %v324_v1, %v322_v0  ;;  %v323_v5 = vld [vmem:[#allocation7 + $0x10] sm:$0xff] (!%p979_p3)  ;;  %v326_v6 = vld [vmem:[#allocation7 + $0x28] sm:$0xff] (!%p979_p3)  ;;  %v328_v7 = vld [vmem:[#allocation7 + $0x38] sm:$0xff] (!%p979_p3)  ;;  %417 = vmatprep.mubr.f32.mxu0 (!%p979_p3), %v1334_v8  ;;  %v446_v61 = vunpack.c.l.s4 (!%p979_p3), %v1335_v60 }
  0x4a   : > { %v987_v9 = vpack.c.bf16 (!%p979_p3), %v323_v5, %v321_v2  ;;  %v989_v10 = vpack.c.bf16 (!%p979_p3), %v328_v7, %v326_v6  ;;  %v325_v11 = vld [vmem:[#allocation7 + $0x20] sm:$0xff] (!%p979_p3)  ;;  %v327_v12 = vld [vmem:[#allocation7 + $0x30] sm:$0xff] (!%p979_p3)  ;;  %v330_v13 = vld [vmem:[#allocation7 + $0x48] sm:$0xff] (!%p979_p3)  ;;  %vm1473_vm0 = vcmp.lt.s32.totalorder (!%p979_p3), %v314_v3, 256 }
  0x4b   : > { %986 = vmatprep.subr.bf16.mxu0 (!%p979_p3), %v985_v4  ;;  %v332_v15 = vld [vmem:[#allocation7 + $0x58] sm:$0xff] (!%p979_p3)  ;;  %318 = vst.msk [vmem:[#allocation3] sm:$0x3] (!%p979_p3), %vm1473_vm0, %v1334_v8  ;;  %319 = vst.msk [vmem:[#allocation4] sm:$0x3] (!%p979_p3), %vm1473_vm0, %v1334_v8  ;;  %v991_v16 = vpack.c.bf16 (!%p979_p3), %v327_v12, %v325_v11  ;;  %v329_v18 = vld [vmem:[#allocation7 + $0x40] sm:$0xff] (!%p979_p3)  ;;  %v447_v7 = vunpack.c.0.s8 (!%p979_p3), %v446_v61 }
  0x4c   : > { %988 = vmatpush1.bf16.msra.mxu0 (!%p979_p3), %v987_v9  ;;  %v993_v17 = vpack.c.bf16 (!%p979_p3), %v332_v15, %v330_v13  ;;  %v331_v19 = vld [vmem:[#allocation7 + $0x50] sm:$0xff] (!%p979_p3)  ;;  %v334_v20 = vld [vmem:[#allocation7 + $0x68] sm:$0xff] (!%p979_p3)  ;;  %v336_v21 = vld [vmem:[#allocation7 + $0x78] sm:$0xff] (!%p979_p3)  ;;  %v449_v8 = vshrl.u32 (!%p979_p3), %v314_v3, 7 }
  0x4d   : > { %990 = vmatprep.subr.bf16.mxu0 (!%p979_p3), %v989_v10  ;;  %v995_v22 = vpack.c.bf16 (!%p979_p3), %v331_v19, %v329_v18  ;;  %v997_v23 = vpack.c.bf16 (!%p979_p3), %v336_v21, %v334_v20  ;;  %v333_v24 = vld [vmem:[#allocation7 + $0x60] sm:$0xff] (!%p979_p3)  ;;  %v335_v25 = vld [vmem:[#allocation7 + $0x70] sm:$0xff] (!%p979_p3)  ;;  %v338_v26 = vld [vmem:[#allocation7 + $0x88] sm:$0xff] (!%p979_p3) }
  0x4e   : > { %v340_v27 = vld [vmem:[#allocation7 + $0x98] sm:$0xff] (!%p979_p3)  ;;  %v999_v28 = vpack.c.bf16 (!%p979_p3), %v335_v25, %v333_v24  ;;  %v337_v30 = vld [vmem:[#allocation7 + $0x80] sm:$0xff] (!%p979_p3)  ;;  %v339_v31 = vld [vmem:[#allocation7 + $0x90] sm:$0xff] (!%p979_p3)  ;;  %v450_v18 = vsub.s32 (!%p979_p3), %v447_v7, %v449_v8 }
  0x4f   : > { %v1001_v29 = vpack.c.bf16 (!%p979_p3), %v340_v27, %v338_v26  ;;  %v342_v32 = vld [vmem:[#allocation7 + $0xa8] sm:$0xff] (!%p979_p3)  ;;  %v344_v33 = vld [vmem:[#allocation7 + $0xb8] sm:$0xff] (!%p979_p3)  ;;  %v1003_v34 = vpack.c.bf16 (!%p979_p3), %v339_v31, %v337_v30  ;;  %v341_v36 = vld [vmem:[#allocation7 + $0xa0] sm:$0xff] (!%p979_p3) }
  0x50   : > { %992 = vmatpush1.bf16.msra.mxu0 %v991_v16  ;;  %v1005_v35 = vpack.c.bf16 %v344_v33, %v342_v32  ;;  %v343_v37 = vld [vmem:[#allocation7 + $0xb0] sm:$0xff]  ;;  %v346_v38 = vld [vmem:[#allocation7 + $0xc8] sm:$0xff]  ;;  %v348_v39 = vld [vmem:[#allocation7 + $0xd8] sm:$0xff] }
  0x51   : > { %994 = vmatprep.subr.bf16.mxu0 %v993_v17  ;;  %v1007_v40 = vpack.c.bf16 %v343_v37, %v341_v36  ;;  %v1009_v41 = vpack.c.bf16 %v348_v39, %v346_v38  ;;  %v345_v42 = vld [vmem:[#allocation7 + $0xc0] sm:$0xff]  ;;  %v347_v43 = vld [vmem:[#allocation7 + $0xd0] sm:$0xff]  ;;  %v350_v44 = vld [vmem:[#allocation7 + $0xe8] sm:$0xff] }
  0x52   : > { %v352_v45 = vld [vmem:[#allocation7 + $0xf8] sm:$0xff]  ;;  %v1011_v46 = vpack.c.bf16 %v347_v43, %v345_v42  ;;  %v349_v48 = vld [vmem:[#allocation7 + $0xe0] sm:$0xff]  ;;  %v351_v49 = vld [vmem:[#allocation7 + $0xf0] sm:$0xff] }
  0x53   : > { %v1013_v47 = vpack.c.bf16 %v352_v45, %v350_v44  ;;  %v1015_v50 = vpack.c.bf16 %v351_v49, %v349_v48  ;;  %v320_v51 = vld [vmem:[%s1540_s0] sm:$0xff]  ;;  %v429_v26 = vld [vmem:[#allocation3] sm:$0x3]  ;;  %v466_v3 = vld [vmem:[#allocation4] sm:$0x3] }
  0x54   : > { %996 = vmatpush1.bf16.msra.mxu0 %v995_v22 }
  0x55   : > { %998 = vmatprep.subr.bf16.mxu0 %v997_v23 }
  0x58   : > { %1000 = vmatpush1.bf16.msra.mxu0 %v999_v28 }
  0x59   : > { %1002 = vmatprep.subr.bf16.mxu0 %v1001_v29 }
  0x5c   : > { %1004 = vmatpush1.bf16.msra.mxu0 %v1003_v34 }
  0x5d   : > { %1006 = vmatprep.subr.bf16.mxu0 %v1005_v35 }
  0x60   : > { %1008 = vmatpush1.bf16.msra.mxu0 %v1007_v40 }
  0x61   : > { %1010 = vmatprep.subr.bf16.mxu0 %v1009_v41 }
  0x64   : > { %1012 = vmatpush1.bf16.msra.mxu0 %v1011_v46 }
  0x65   : > { %1014 = vmatprep.subr.bf16.mxu0 %v1013_v47 }
  0x68   : > { %1016 = vmatpush1.bf16.msra.mxu0 %v1015_v50 }
  0x6b   : > { %418 = vmatmul.mubr.f32.vlgmr.msra.gmra.mrb[0].mxu0 %v320_v51 }
 0x13e   : > { %v419_v52 = vpop.f32.mrb[0].mxu0 }
 0x13f   : > { %427 = vst [vmem:[#allocation2] sm:$0xff] %v419_v52  ;;  %v430_v53 = vrot.slane %v419_v52, 4  ;;  %v467_v54 = vmul.f32 %v419_v52, %v419_v52  ;;  %v421_v55 = vpop.f32.mrb[1].mxu0 }
 0x140   : > { %428 = vst [vmem:[#allocation2 + $0x8] sm:$0xff] %v421_v55  ;;  %v436_v56 = vrot.slane %v421_v55, 4  ;;  %v468_v57 = vmul.f32 %v421_v55, %v421_v55 }
 0x141   : > { %v431_v58 = vadd.f32 %v430_v53, %v419_v52  ;;  %v469_v59 = vrot.slane %v467_v54, 4 }
 0x142   : > { %v437_v62 = vadd.f32 %v436_v56, %v421_v55  ;;  %v475_v63 = vrot.slane %v468_v57, 4 }
 0x143   : > { %v432_v0 = vrot.slane %v431_v58, 2  ;;  %v470_v1 = vadd.f32 %v469_v59, %v467_v54 }
 0x144   : > { %v438_v2 = vrot.slane %v437_v62, 2  ;;  %v476_v4 = vadd.f32 %v475_v63, %v468_v57 }
 0x145   : > { %v433_v5 = vadd.f32 %v432_v0, %v431_v58  ;;  %v471_v6 = vrot.slane %v470_v1, 2 }
 0x146   : > { %v439_v9 = vadd.f32 %v438_v2, %v437_v62  ;;  %v477_v10 = vrot.slane %v476_v4, 2 }
 0x147   : > { %v434_v11 = vrot.slane %v433_v5, 1  ;;  %v472_v12 = vadd.f32 %v471_v6, %v470_v1 }
 0x148   : > { %v440_v13 = vrot.slane %v439_v9, 1  ;;  %v478_v15 = vadd.f32 %v477_v10, %v476_v4 }
 0x149   : > { %v435_v16 = vadd.f32 %v434_v11, %v433_v5  ;;  %v473_v17 = vrot.slane %v472_v12, 1 }
 0x14a   : > { %v441_v19 = vadd.f32 %v440_v13, %v439_v9  ;;  %v479_v20 = vrot.slane %v478_v15, 1 }
 0x14b   : > { %v474_v21 = vadd.f32 %v473_v17, %v472_v12 }
 0x14c   : > { %v444_v22 = vcombine.low %v435_v16, %v441_v19  ;;  %v480_v23 = vadd.f32 %v479_v20, %v478_v15 }
 0x14e   : > { %v451_v24 = vrot.slane %v444_v22, %v450_v18  ;;  %v483_v25 = vcombine.low %v474_v21, %v480_v23 }
 0x150   : > { %v458_v27 = vrot.slane %v451_v24, %v450_v18  ;;  %v490_v28 = vrot.slane %v483_v25, %v450_v18 }
 0x152   : > { %v460_v29 = vadd.f32 %v458_v27, %v429_v26  ;;  %v497_v30 = vrot.slane %v490_v28, %v450_v18 }
 0x154   : > { %465 = vst.msk [vmem:[#allocation3] sm:$0x3] %vm1473_vm0, %v460_v29  ;;  %v499_v31 = vadd.f32 %v497_v30, %v466_v3 }
 0x156   : > { %500 = vst.msk [vmem:[#allocation4] sm:$0x3] %vm1473_vm0, %v499_v31 }
 0x157 PF: > { %p980_p6 = scmp.ne.s32.totalorder %s1318_s21, 1 }
 0x158   : > { %v565_v32 = vld [vmem:[#allocation10 + $0x8] sm:$0xff] (!%p980_p6)  ;;  %v567_v34 = vld [vmem:[#allocation10 + $0x18] sm:$0xff] (!%p980_p6)  ;;  %v564_v37 = vld [vmem:[#allocation10] sm:$0xff] (!%p980_p6) }
 0x159   : > { %504 = sbr.rel (%p980_p6) target bundleno = 635 (0x27b), region = 64  ;;  %v569_v33 = vld [vmem:[#allocation10 + $0x28] sm:$0xff] (!%p980_p6)  ;;  %v571_v36 = vld [vmem:[#allocation10 + $0x38] sm:$0xff] (!%p980_p6)  ;;  %v568_v38 = vld [vmem:[#allocation10 + $0x20] sm:$0xff] (!%p980_p6) }
 0x15a   : > { %v1017_v35 = vpack.c.bf16 (!%p980_p6), %v569_v33, %v565_v32  ;;  %v1081_v39 = vpack.c.bf16 (!%p980_p6), %v571_v36, %v567_v34  ;;  %v1019_v40 = vpack.c.bf16 (!%p980_p6), %v568_v38, %v564_v37  ;;  %v566_v41 = vld [vmem:[#allocation10 + $0x10] sm:$0xff] (!%p980_p6)  ;;  %v573_v43 = vld [vmem:[#allocation10 + $0x48] sm:$0xff] (!%p980_p6)  ;;  %v575_v45 = vld [vmem:[#allocation10 + $0x58] sm:$0xff] (!%p980_p6) }
 0x15b   : > { %v570_v42 = vld [vmem:[#allocation10 + $0x30] sm:$0xff] (!%p980_p6)  ;;  %v577_v14 = vld [vmem:[#allocation10 + $0x68] sm:$0xff] (!%p980_p6)  ;;  %v579_v46 = vld [vmem:[#allocation10 + $0x78] sm:$0xff] (!%p980_p6) }
 0x15c   : > { %1018 = vmatprep.subr.bf16.mxu0 (!%p980_p6), %v1017_v35  ;;  %v1083_v44 = vpack.c.bf16 (!%p980_p6), %v570_v42, %v566_v41  ;;  %1082 = vmatprep.subr.bf16.mxu1 (!%p980_p6), %v1081_v39  ;;  %v1021_v47 = vpack.c.bf16 (!%p980_p6), %v577_v14, %v573_v43  ;;  %v1085_v48 = vpack.c.bf16 (!%p980_p6), %v579_v46, %v575_v45  ;;  %v572_v49 = vld [vmem:[#allocation10 + $0x40] sm:$0xff] (!%p980_p6)  ;;  %v574_v51 = vld [vmem:[#allocation10 + $0x50] sm:$0xff] (!%p980_p6)  ;;  %v581_v54 = vld [vmem:[#allocation10 + $0x88] sm:$0xff] (!%p980_p6) }
 0x15d   : > { %1020 = vmatpush1.bf16.msra.mxu0 (!%p980_p6), %v1019_v40  ;;  %v576_v50 = vld [vmem:[#allocation10 + $0x60] sm:$0xff] (!%p980_p6)  ;;  %v578_v53 = vld [vmem:[#allocation10 + $0x70] sm:$0xff] (!%p980_p6)  ;;  %v585_v55 = vld [vmem:[#allocation10 + $0xa8] sm:$0xff] (!%p980_p6) }
 0x15e   : > { %1084 = vmatpush1.bf16.msra.mxu1 (!%p980_p6), %v1083_v44  ;;  %v1023_v52 = vpack.c.bf16 (!%p980_p6), %v576_v50, %v572_v49  ;;  %1022 = vmatprep.subr.bf16.mxu0 (!%p980_p6), %v1021_v47  ;;  %v1087_v56 = vpack.c.bf16 (!%p980_p6), %v578_v53, %v574_v51  ;;  %v1025_v57 = vpack.c.bf16 (!%p980_p6), %v585_v55, %v581_v54  ;;  %v583_v58 = vld [vmem:[#allocation10 + $0x98] sm:$0xff] (!%p980_p6)  ;;  %v580_v60 = vld [vmem:[#allocation10 + $0x80] sm:$0xff] (!%p980_p6)  ;;  %v582_v63 = vld [vmem:[#allocation10 + $0x90] sm:$0xff] (!%p980_p6) }
 0x15f   : > { %1086 = vmatprep.subr.bf16.mxu1 (!%p980_p6), %v1085_v48  ;;  %v587_v59 = vld [vmem:[#allocation10 + $0xb8] sm:$0xff] (!%p980_p6)  ;;  %v584_v62 = vld [vmem:[#allocation10 + $0xa0] sm:$0xff] (!%p980_p6)  ;;  %v586_v0 = vld [vmem:[#allocation10 + $0xb0] sm:$0xff] (!%p980_p6) }
 0x160   : > { %v1089_v61 = vpack.c.bf16 %v587_v59, %v583_v58  ;;  %v1027_v1 = vpack.c.bf16 %v584_v62, %v580_v60  ;;  %v589_v2 = vld [vmem:[#allocation10 + $0xc8] sm:$0xff]  ;;  %v591_v5 = vld [vmem:[#allocation10 + $0xd8] sm:$0xff]  ;;  %v1091_v6 = vpack.c.bf16 %v586_v0, %v582_v63  ;;  %v588_v9 = vld [vmem:[#allocation10 + $0xc0] sm:$0xff] }
 0x161   : > { %1024 = vmatpush1.bf16.msra.mxu0 %v1023_v52  ;;  %v593_v4 = vld [vmem:[#allocation10 + $0xe8] sm:$0xff]  ;;  %v595_v8 = vld [vmem:[#allocation10 + $0xf8] sm:$0xff]  ;;  %v592_v10 = vld [vmem:[#allocation10 + $0xe0] sm:$0xff] }
 0x162   : > { %1088 = vmatpush1.bf16.msra.mxu1 %v1087_v56  ;;  %1026 = vmatprep.subr.bf16.mxu0 %v1025_v57  ;;  %v1029_v7 = vpack.c.bf16 %v593_v4, %v589_v2  ;;  %v1093_v11 = vpack.c.bf16 %v595_v8, %v591_v5  ;;  %v590_v12 = vld [vmem:[#allocation10 + $0xd0] sm:$0xff]  ;;  %v597_v15 = vld [vmem:[#allocation10 + $0x108] sm:$0xff]  ;;  %v599_v17 = vld [vmem:[#allocation10 + $0x118] sm:$0xff]  ;;  %v1031_v19 = vpack.c.bf16 %v592_v10, %v588_v9 }
 0x163   : > { %1090 = vmatprep.subr.bf16.mxu1 %v1089_v61  ;;  %v594_v13 = vld [vmem:[#allocation10 + $0xf0] sm:$0xff]  ;;  %v601_v16 = vld [vmem:[#allocation10 + $0x128] sm:$0xff]  ;;  %v603_v18 = vld [vmem:[#allocation10 + $0x138] sm:$0xff] }
 0x164   : > { %v1095_v20 = vpack.c.bf16 %v594_v13, %v590_v12  ;;  %v1033_v21 = vpack.c.bf16 %v601_v16, %v597_v15  ;;  %v596_v22 = vld [vmem:[#allocation10 + $0x100] sm:$0xff]  ;;  %v598_v24 = vld [vmem:[#allocation10 + $0x110] sm:$0xff]  ;;  %v1097_v25 = vpack.c.bf16 %v603_v18, %v599_v17  ;;  %v605_v27 = vld [vmem:[#allocation10 + $0x148] sm:$0xff] }
 0x165   : > { %1028 = vmatpush1.bf16.msra.mxu0 %v1027_v1  ;;  %v600_v23 = vld [vmem:[#allocation10 + $0x120] sm:$0xff]  ;;  %v602_v26 = vld [vmem:[#allocation10 + $0x130] sm:$0xff]  ;;  %v609_v28 = vld [vmem:[#allocation10 + $0x168] sm:$0xff] }
 0x166   : > { %1092 = vmatpush1.bf16.msra.mxu1 %v1091_v6  ;;  %1030 = vmatprep.subr.bf16.mxu0 %v1029_v7  ;;  %v607_v3 = vld [vmem:[#allocation10 + $0x158] sm:$0xff]  ;;  %v1035_v30 = vpack.c.bf16 %v600_v23, %v596_v22  ;;  %v1099_v31 = vpack.c.bf16 %v602_v26, %v598_v24  ;;  %v1037_v32 = vpack.c.bf16 %v609_v28, %v605_v27  ;;  %v604_v33 = vld [vmem:[#allocation10 + $0x140] sm:$0xff]  ;;  %v606_v35 = vld [vmem:[#allocation10 + $0x150] sm:$0xff] }
 0x167   : > { %1094 = vmatprep.subr.bf16.mxu1 %v1093_v11  ;;  %v611_v29 = vld [vmem:[#allocation10 + $0x178] sm:$0xff]  ;;  %v608_v34 = vld [vmem:[#allocation10 + $0x160] sm:$0xff]  ;;  %v610_v37 = vld [vmem:[#allocation10 + $0x170] sm:$0xff] }
 0x168   : > { %v1101_v36 = vpack.c.bf16 %v611_v29, %v607_v3  ;;  %v613_v38 = vld [vmem:[#allocation10 + $0x188] sm:$0xff]  ;;  %v615_v40 = vld [vmem:[#allocation10 + $0x198] sm:$0xff]  ;;  %v1039_v42 = vpack.c.bf16 %v608_v34, %v604_v33  ;;  %v1103_v43 = vpack.c.bf16 %v610_v37, %v606_v35  ;;  %v612_v14 = vld [vmem:[#allocation10 + $0x180] sm:$0xff] }
 0x169   : > { %1032 = vmatpush1.bf16.msra.mxu0 %v1031_v19  ;;  %v617_v39 = vld [vmem:[#allocation10 + $0x1a8] sm:$0xff]  ;;  %v619_v41 = vld [vmem:[#allocation10 + $0x1b8] sm:$0xff]  ;;  %v616_v45 = vld [vmem:[#allocation10 + $0x1a0] sm:$0xff] }
 0x16a   : > { %1096 = vmatpush1.bf16.msra.mxu1 %v1095_v20  ;;  %1034 = vmatprep.subr.bf16.mxu0 %v1033_v21  ;;  %v1041_v44 = vpack.c.bf16 %v617_v39, %v613_v38  ;;  %v614_v46 = vld [vmem:[#allocation10 + $0x190] sm:$0xff]  ;;  %v1105_v47 = vpack.c.bf16 %v619_v41, %v615_v40  ;;  %v621_v49 = vld [vmem:[#allocation10 + $0x1c8] sm:$0xff]  ;;  %v623_v51 = vld [vmem:[#allocation10 + $0x1d8] sm:$0xff]  ;;  %v1043_v53 = vpack.c.bf16 %v616_v45, %v612_v14 }
 0x16b   : > { %1098 = vmatprep.subr.bf16.mxu1 %v1097_v25  ;;  %v618_v48 = vld [vmem:[#allocation10 + $0x1b0] sm:$0xff]  ;;  %v625_v50 = vld [vmem:[#allocation10 + $0x1e8] sm:$0xff]  ;;  %v627_v52 = vld [vmem:[#allocation10 + $0x1f8] sm:$0xff] }
 0x16c   : > { %v1107_v54 = vpack.c.bf16 %v618_v48, %v614_v46  ;;  %v1045_v55 = vpack.c.bf16 %v625_v50, %v621_v49  ;;  %v620_v56 = vld [vmem:[#allocation10 + $0x1c0] sm:$0xff]  ;;  %v622_v58 = vld [vmem:[#allocation10 + $0x1d0] sm:$0xff]  ;;  %v1109_v59 = vpack.c.bf16 %v627_v52, %v623_v51  ;;  %v629_v61 = vld [vmem:[#allocation10 + $0x208] sm:$0xff] }
 0x16d   : > { %1036 = vmatpush1.bf16.msra.mxu0 %v1035_v30  ;;  %v624_v57 = vld [vmem:[#allocation10 + $0x1e0] sm:$0xff]  ;;  %v626_v60 = vld [vmem:[#allocation10 + $0x1f0] sm:$0xff]  ;;  %v633_v62 = vld [vmem:[#allocation10 + $0x228] sm:$0xff] }
 0x16e   : > { %1100 = vmatpush1.bf16.msra.mxu1 %v1099_v31  ;;  %1038 = vmatprep.subr.bf16.mxu0 %v1037_v32  ;;  %v631_v63 = vld [vmem:[#allocation10 + $0x218] sm:$0xff]  ;;  %v1047_v1 = vpack.c.bf16 %v624_v57, %v620_v56  ;;  %v1111_v2 = vpack.c.bf16 %v626_v60, %v622_v58  ;;  %v1049_v4 = vpack.c.bf16 %v633_v62, %v629_v61  ;;  %v628_v5 = vld [vmem:[#allocation10 + $0x200] sm:$0xff]  ;;  %v630_v7 = vld [vmem:[#allocation10 + $0x210] sm:$0xff] }
 0x16f   : > { %1102 = vmatprep.subr.bf16.mxu1 %v1101_v36  ;;  %v635_v0 = vld [vmem:[#allocation10 + $0x238] sm:$0xff]  ;;  %v632_v6 = vld [vmem:[#allocation10 + $0x220] sm:$0xff]  ;;  %v634_v9 = vld [vmem:[#allocation10 + $0x230] sm:$0xff] }
 0x170   : > { %v1113_v8 = vpack.c.bf16 %v635_v0, %v631_v63  ;;  %v637_v10 = vld [vmem:[#allocation10 + $0x248] sm:$0xff]  ;;  %v639_v12 = vld [vmem:[#allocation10 + $0x258] sm:$0xff]  ;;  %v1051_v15 = vpack.c.bf16 %v632_v6, %v628_v5  ;;  %v1115_v16 = vpack.c.bf16 %v634_v9, %v630_v7  ;;  %v636_v18 = vld [vmem:[#allocation10 + $0x240] sm:$0xff] }
 0x171   : > { %1040 = vmatpush1.bf16.msra.mxu0 %v1039_v42  ;;  %v641_v11 = vld [vmem:[#allocation10 + $0x268] sm:$0xff]  ;;  %v643_v13 = vld [vmem:[#allocation10 + $0x278] sm:$0xff]  ;;  %v640_v19 = vld [vmem:[#allocation10 + $0x260] sm:$0xff] }
 0x172   : > { %1104 = vmatpush1.bf16.msra.mxu1 %v1103_v43  ;;  %1042 = vmatprep.subr.bf16.mxu0 %v1041_v44  ;;  %v1053_v17 = vpack.c.bf16 %v641_v11, %v637_v10  ;;  %v638_v20 = vld [vmem:[#allocation10 + $0x250] sm:$0xff]  ;;  %v1117_v21 = vpack.c.bf16 %v643_v13, %v639_v12  ;;  %v645_v23 = vld [vmem:[#allocation10 + $0x288] sm:$0xff]  ;;  %v647_v25 = vld [vmem:[#allocation10 + $0x298] sm:$0xff]  ;;  %v1055_v27 = vpack.c.bf16 %v640_v19, %v636_v18 }
 0x173   : > { %1106 = vmatprep.subr.bf16.mxu1 %v1105_v47  ;;  %v642_v22 = vld [vmem:[#allocation10 + $0x270] sm:$0xff]  ;;  %v649_v24 = vld [vmem:[#allocation10 + $0x2a8] sm:$0xff]  ;;  %v651_v26 = vld [vmem:[#allocation10 + $0x2b8] sm:$0xff] }
 0x174   : > { %v1119_v28 = vpack.c.bf16 %v642_v22, %v638_v20  ;;  %v1057_v3 = vpack.c.bf16 %v649_v24, %v645_v23  ;;  %v644_v29 = vld [vmem:[#allocation10 + $0x280] sm:$0xff]  ;;  %v646_v31 = vld [vmem:[#allocation10 + $0x290] sm:$0xff]  ;;  %v1121_v32 = vpack.c.bf16 %v651_v26, %v647_v25  ;;  %v653_v34 = vld [vmem:[#allocation10 + $0x2c8] sm:$0xff] }
 0x175   : > { %1044 = vmatpush1.bf16.msra.mxu0 %v1043_v53  ;;  %v648_v30 = vld [vmem:[#allocation10 + $0x2a0] sm:$0xff]  ;;  %v650_v33 = vld [vmem:[#allocation10 + $0x2b0] sm:$0xff]  ;;  %v657_v35 = vld [vmem:[#allocation10 + $0x2e8] sm:$0xff] }
 0x176   : > { %1108 = vmatpush1.bf16.msra.mxu1 %v1107_v54  ;;  %1046 = vmatprep.subr.bf16.mxu0 %v1045_v55  ;;  %v655_v36 = vld [vmem:[#allocation10 + $0x2d8] sm:$0xff]  ;;  %v1059_v38 = vpack.c.bf16 %v648_v30, %v644_v29  ;;  %v652_v39 = vld [vmem:[#allocation10 + $0x2c0] sm:$0xff]  ;;  %v1123_v40 = vpack.c.bf16 %v650_v33, %v646_v31  ;;  %v1061_v41 = vpack.c.bf16 %v657_v35, %v653_v34  ;;  %v654_v43 = vld [vmem:[#allocation10 + $0x2d0] sm:$0xff] }
 0x177   : > { %1110 = vmatprep.subr.bf16.mxu1 %v1109_v59  ;;  %v659_v37 = vld [vmem:[#allocation10 + $0x2f8] sm:$0xff]  ;;  %v656_v42 = vld [vmem:[#allocation10 + $0x2e0] sm:$0xff]  ;;  %v658_v44 = vld [vmem:[#allocation10 + $0x2f0] sm:$0xff] }
 0x178   : > { %v1125_v14 = vpack.c.bf16 %v659_v37, %v655_v36  ;;  %v661_v45 = vld [vmem:[#allocation10 + $0x308] sm:$0xff]  ;;  %v509_v47 = vld [vmem:[#allocation3] sm:$0x3]  ;;  %v511_v51 = vld [vmem:[#allocation4] sm:$0x3]  ;;  %v1063_v52 = vpack.c.bf16 %v656_v42, %v652_v39  ;;  %v1127_v54 = vpack.c.bf16 %v658_v44, %v654_v43 }
 0x179   : > { %1048 = vmatpush1.bf16.msra.mxu0 %v1047_v1  ;;  %v665_v46 = vld [vmem:[#allocation10 + $0x328] sm:$0xff]  ;;  %v663_v48 = vld [vmem:[#allocation10 + $0x318] sm:$0xff]  ;;  %v1490_v50 = vmul.f32 0.125, %v509_v47  ;;  %v512_v53 = vmul.f32 0.125, %v511_v51  ;;  %v660_v56 = vld [vmem:[#allocation10 + $0x300] sm:$0xff] }
 0x17a   : > { %1112 = vmatpush1.bf16.msra.mxu1 %v1111_v2  ;;  %1050 = vmatprep.subr.bf16.mxu0 %v1049_v4  ;;  %v667_v49 = vld [vmem:[#allocation10 + $0x338] sm:$0xff]  ;;  %v1065_v55 = vpack.c.bf16 %v665_v46, %v661_v45  ;;  %v664_v57 = vld [vmem:[#allocation10 + $0x320] sm:$0xff]  ;;  %v662_v58 = vld [vmem:[#allocation10 + $0x310] sm:$0xff] }
 0x17b   : > { %1114 = vmatprep.subr.bf16.mxu1 %v1113_v8  ;;  %v513_v59 = vmul.f32 %v1490_v50, %v1490_v50  ;;  %v1129_v60 = vpack.c.bf16 %v667_v49, %v663_v48  ;;  %v666_v61 = vld [vmem:[#allocation10 + $0x330] sm:$0xff]  ;;  %v669_v62 = vld [vmem:[#allocation10 + $0x348] sm:$0xff]  ;;  %v671_v0 = vld [vmem:[#allocation10 + $0x358] sm:$0xff]  ;;  %v1067_v4 = vpack.c.bf16 %v664_v57, %v660_v56 }
 0x17c   : > { %v673_v63 = vld [vmem:[#allocation10 + $0x368] sm:$0xff]  ;;  %v675_v1 = vld [vmem:[#allocation10 + $0x378] sm:$0xff]  ;;  %v1131_v5 = vpack.c.bf16 %v666_v61, %v662_v58  ;;  %v668_v7 = vld [vmem:[#allocation10 + $0x340] sm:$0xff] }
 0x17d   : > { %1052 = vmatpush1.bf16.msra.mxu0 %v1051_v15  ;;  %v514_v2 = vsub.f32 %v512_v53, %v513_v59  ;;  %v1069_v6 = vpack.c.bf16 %v673_v63, %v669_v62  ;;  %v672_v8 = vld [vmem:[#allocation10 + $0x360] sm:$0xff]  ;;  %v670_v9 = vld [vmem:[#allocation10 + $0x350] sm:$0xff]  ;;  %v1133_v11 = vpack.c.bf16 %v675_v1, %v671_v0  ;;  %v677_v13 = vld [vmem:[#allocation10 + $0x388] sm:$0xff] }
 0x17e   : > { %1116 = vmatpush1.bf16.msra.mxu1 %v1115_v16  ;;  %1054 = vmatprep.subr.bf16.mxu0 %v1053_v17  ;;  %v674_v12 = vld [vmem:[#allocation10 + $0x370] sm:$0xff]  ;;  %v681_v15 = vld [vmem:[#allocation10 + $0x3a8] sm:$0xff]  ;;  %v679_v16 = vld [vmem:[#allocation10 + $0x398] sm:$0xff]  ;;  %v1071_v19 = vpack.c.bf16 %v672_v8, %v668_v7 }
 0x17f   : > { %1118 = vmatprep.subr.bf16.mxu1 %v1117_v21  ;;  %v515_v10 = vmax.f32 %v514_v2, 0.0  ;;  %v683_v17 = vld [vmem:[#allocation10 + $0x3b8] sm:$0xff]  ;;  %v1135_v20 = vpack.c.bf16 %v674_v12, %v670_v9  ;;  %v1073_v21 = vpack.c.bf16 %v681_v15, %v677_v13  ;;  %v676_v22 = vld [vmem:[#allocation10 + $0x380] sm:$0xff]  ;;  %v678_v24 = vld [vmem:[#allocation10 + $0x390] sm:$0xff] }
 0x180   : > { %v680_v23 = vld [vmem:[#allocation10 + $0x3a0] sm:$0xff]  ;;  %v1137_v25 = vpack.c.bf16 %v683_v17, %v679_v16  ;;  %v682_v26 = vld [vmem:[#allocation10 + $0x3b0] sm:$0xff]  ;;  %v691_v29 = vld [vmem:[#allocation10 + $0x3f8] sm:$0xff] }
 0x181   : > { %1056 = vmatpush1.bf16.msra.mxu0 %v1055_v27  ;;  %v517_v18 = vadd.f32 1e-05, %v515_v10  ;;  %v685_v27 = vld [vmem:[#allocation10 + $0x3c8] sm:$0xff]  ;;  %v1075_v30 = vpack.c.bf16 %v680_v23, %v676_v22  ;;  %v1139_v31 = vpack.c.bf16 %v682_v26, %v678_v24  ;;  %v684_v33 = vld [vmem:[#allocation10 + $0x3c0] sm:$0xff]  ;;  %v686_v36 = vld [vmem:[#allocation10 + $0x3d0] sm:$0xff] }
 0x182   : > { %1120 = vmatpush1.bf16.msra.mxu1 %v1119_v28  ;;  %1058 = vmatprep.subr.bf16.mxu0 %v1057_v3  ;;  %v689_v28 = vld [vmem:[#allocation10 + $0x3e8] sm:$0xff]  ;;  %v687_v3 = vld [vmem:[#allocation10 + $0x3d8] sm:$0xff]  ;;  %v688_v34 = vld [vmem:[#allocation10 + $0x3e0] sm:$0xff] }
 0x183   : > { %1122 = vmatprep.subr.bf16.mxu1 %v1121_v32  ;;  %1208 = vrsqrt.f32 %v517_v18  ;;  %v1077_v32 = vpack.c.bf16 %v689_v28, %v685_v27  ;;  %v1141_v35 = vpack.c.bf16 %v691_v29, %v687_v3  ;;  %v690_v37 = vld [vmem:[#allocation10 + $0x3f0] sm:$0xff]  ;;  %v1079_v39 = vpack.c.bf16 %v688_v34, %v684_v33  ;;  %v525_v44 = vld [vmem:[%s1543_s3] sm:$0x3] }
 0x184   : > { %v533_v49 = vld [vmem:[#allocation2 + $0x8] sm:$0xff]  ;;  %v692_v0 = vld [vmem:[%s1545_s5] sm:$0xf] }
 0x185   : > { %1060 = vmatpush1.bf16.msra.mxu0 %v1059_v38  ;;  %v520_v38 = vlaneseq }
 0x186   : > { %1124 = vmatpush1.bf16.msra.mxu1 %v1123_v40  ;;  %1062 = vmatprep.subr.bf16.mxu0 %v1061_v41  ;;  %v1143_v40 = vpack.c.bf16 %v690_v37, %v686_v36  ;;  %v516_v41 = vld [vmem:[%s1542_s2] sm:$0x3] }
 0x187   : > { %1126 = vmatprep.subr.bf16.mxu1 %v1125_v14  ;;  %vm522_vm1 = vcmp.lt.s32.totalorder %v520_v38, 256  ;;  %v537_v45 = vshrl.u32 %v520_v38, 7 }
 0x189   : > { %1064 = vmatpush1.bf16.msra.mxu0 %v1063_v52  ;;  %v538_v47 = vsub.s32 0, %v537_v45  ;;  %v542_v48 = vsub.s32 1, %v537_v45  ;;  %v532_v52 = vld [vmem:[#allocation2] sm:$0xff]  ;;  %v708_v1 = vsub.s32 3, %v537_v45 }
 0x18a   : > { %1128 = vmatpush1.bf16.msra.mxu1 %v1127_v54  ;;  %1066 = vmatprep.subr.bf16.mxu0 %v1065_v55 }
 0x18b   : > { %1130 = vmatprep.subr.bf16.mxu1 %v1129_v60  ;;  %v697_v2 = vrot.slane %v692_v0, %v538_v47 }
 0x18d   : > { %1068 = vmatpush1.bf16.msra.mxu0 %v1067_v4  ;;  %v1209_v42 = vpop.eup %1208 }
 0x18e   : > { %1132 = vmatpush1.bf16.msra.mxu1 %v1131_v5  ;;  %1070 = vmatprep.subr.bf16.mxu0 %v1069_v6  ;;  %v519_v43 = vmul.f32 %v1209_v42, %v516_v41  ;;  %v701_v5 = vrot.slane %v692_v0, %v542_v48  ;;  %v709_v6 = vrot.slane %v692_v0, %v708_v1 }
 0x18f   : > { %1134 = vmatprep.subr.bf16.mxu1 %v1133_v11 }
 0x190   : > { %524 = vst.msk [vmem:[#allocation5] sm:$0x3] %vm522_vm1, %v519_v43  ;;  %v526_v14 = vmul.f32 %v519_v43, %v1490_v50  ;;  %v704_v50 = vsub.s32 2, %v537_v45 }
 0x191   : > { %1072 = vmatpush1.bf16.msra.mxu0 %v1071_v19 }
 0x192   : > { %1136 = vmatpush1.bf16.msra.mxu1 %v1135_v20  ;;  %1074 = vmatprep.subr.bf16.mxu0 %v1073_v21  ;;  %v527_v46 = vsub.f32 %v525_v44, %v526_v14  ;;  %v705_v4 = vrot.slane %v692_v0, %v704_v50 }
 0x193   : > { %1138 = vmatprep.subr.bf16.mxu1 %v1137_v25 }
 0x194   : > { %528 = vst.msk [vmem:[#allocation6] sm:$0x3] %vm522_vm1, %v527_v46 }
 0x195   : > { %1076 = vmatpush1.bf16.msra.mxu0 %v1075_v30 }
 0x196   : > { %1140 = vmatpush1.bf16.msra.mxu1 %v1139_v31  ;;  %1078 = vmatprep.subr.bf16.mxu0 %v1077_v32 }
 0x197   : > { %1142 = vmatprep.subr.bf16.mxu1 %v1141_v35  ;;  %v534_v51 = vld [vmem:[#allocation5] sm:$0x3] }
 0x198   : > { %v539_v53 = vrot.slane %v534_v51, %v538_v47  ;;  %v543_v54 = vrot.slane %v534_v51, %v542_v48 }
 0x199   : > { %1080 = vmatpush1.bf16.msra.mxu0 %v1079_v39 }
 0x19a   : > { %1144 = vmatpush1.bf16.msra.mxu1 %v1143_v40  ;;  %v547_v55 = vmul.f32 %v543_v54, %v533_v49  ;;  %v546_v56 = vmul.f32 %v539_v53, %v532_v52 }
 0x19b   : > { %v548_v57 = vld [vmem:[#allocation6] sm:$0x3] }
 0x19c   : > { %v553_v58 = vrot.slane %v548_v57, %v538_v47  ;;  %v557_v59 = vrot.slane %v548_v57, %v542_v48 }
 0x19e   : > { %v561_v60 = vadd.f32 %v557_v59, %v547_v55  ;;  %v560_v61 = vadd.f32 %v553_v58, %v546_v56 }
 0x1a0   : > { %v563_v62 = vmax.f32 %v561_v60, 0.0  ;;  %v562_v63 = vmax.f32 %v560_v61, 0.0 }
 0x1a2   : > { %778 = vmatprep.mubr.f32.mxu0 %v563_v62  ;;  %849 = vmatprep.mubr.f32.mxu1 %v563_v62 }
 0x1a3   : > { %779 = vmatmul.mubr.f32.vlgmr.msra.gmra.mrb[0].mxu0 %v562_v63  ;;  %850 = vmatmul.mubr.f32.vlgmr.msra.gmra.mrb[0].mxu1 %v562_v63 }
 0x276   : > { %v780_v7 = vpop.f32.mrb[0].mxu0  ;;  %v851_v8 = vpop.f32.mrb[0].mxu1 }
 0x277   : > { %v781_v9 = vadd.f32 %v780_v7, %v697_v2  ;;  %v852_v10 = vadd.f32 %v851_v8, %v705_v4  ;;  %v782_v11 = vpop.f32.mrb[1].mxu0  ;;  %v853_v12 = vpop.f32.mrb[1].mxu1 }
 0x278   : > { %v783_v13 = vadd.f32 %v782_v11, %v701_v5  ;;  %v854_v15 = vadd.f32 %v853_v12, %v709_v6 }
 0x279   : > { %856 = vst [vmem:[#allocation12] sm:$0xff] %v781_v9  ;;  %858 = vst [vmem:[#allocation12 + $0x10] sm:$0xff] %v852_v10 }
 0x27a   : > { %857 = vst [vmem:[#allocation12 + $0x8] sm:$0xff] %v783_v13  ;;  %859 = vst [vmem:[#allocation12 + $0x18] sm:$0xff] %v854_v15 }
 0x27b PF: > { %p1506_p4 = scmp.eq.s32.totalorder %s969_s24, 1  ;;  %s1336_s11 = smov [#allocation12]  }
 0x27c   : > { %s876_s12 = sshll.u32 %s1336_s11, 4  ;;  %s877_s12 = int_to_ptr.vmem [resolvable:$true] %s876_s12 }
 0x27d   : > { %s1266_s13 = scalar_lea.vmem %s877_s12, 512  ;;  %s1272_s14 = scalar_lea.vmem %s877_s12, 1024 }
 0x27e   : > { %p1267_p9 = scmp.ne.s32.totalorder %s877_s12, %s1266_s13  ;;  %p1273_p12 = scmp.lt.s32.totalorder %s877_s12, %s877_s12 }
 0x27f   : > { %p1274_p13 = scmp.lt.s32.totalorder %s1272_s14, %s1266_s13 }
 0x280   : > { %p1268_p10 = pnand %p1267_p9, %p1506_p4 }
 0x281   : > { %p1275_p0 = por %p1274_p13, %p1273_p12 }
 0x282   : > { %p1269_p11 = pneg %p1268_p10 }
 0x284   : > { %p1276_p1 = pnand %p1275_p0, %p1269_p11 }
 0x286   : > { %1279 = shalt.err (!%p1276_p1)
}
 0x287   : > { %s1280_s30 = scalar_lea.hbm %s1546_s6, 512 }
 0x288   : > { %p1281_p2 = scmp.ne.s32.totalorder %s1546_s6, %s1280_s30  ;;  %p1286_p8 = scmp.lt.u32.totalorder %s1280_s30, %s1546_s6 }
 0x28a   : > { %p1282_p5 = pnand %p1281_p2, %p1506_p4 }
 0x28c   : > { %p1283_p7 = pneg %p1282_p5 }
 0x28e   : > { %p1288_p3 = pnand %p1286_p8, %p1283_p7 }
 0x290   : > { %1291 = shalt.err (!%p1288_p3)
}
 0x291   : > { %1154 = dma.vmem_to_hbm [thread:$0]  (%p1506_p4), %s877_s12, 512, %s1546_s6, [#allocation9]  }
 0x292 PF: > { %p1173_p6 = scmp.ge.s32.totalorder %s1326_s23, 2  ;;  %p1174_p9 = scmp.eq.s32.totalorder %s970_s25, 1 }
 0x294   : > { %p1165_p10 = pnand %p1174_p9, %p1173_p6 }
 0x296   : > { %1313 = dma.done.wait (!%p1165_p10), [#allocation9], 512  }
 0x297   : > { %1315 = vsyncadd (!%p1165_p10), [#allocation9], 4294966784  ;;  %s21_s23 = sadd.s32 1, %s1326_s23   ;;  %s1558_s21 = smov %s1322_s22 }
 0x298   : > { %p18_p11 = scmp.ge.s32.totalorder %s21_s23, 4   ;;  %s1559_s22 = smov %s1561_s26 }
 0x29a   :  { %20 = sbr.rel (!%p18_p11) target bundleno = 5 (0x5), region = 106 }
 0x2a1   :  { %894 = vsyncpa [#allocation8], 1 }
 0x2a2   :  { %896 = vsyncpa [#allocation8 + $0x1], 1 }
 0x2a3   :  { %897 = vsyncpa [#allocation11], 1 }
 0x2a4   :  { %898 = vsyncpa [#allocation9], 1 }
 0x2a5   :  { %900 = vsyncpa [#allocation9 + $0x1], 1 }

</bundles_post_ra>
